<compile_context>
chip_gen: v5e
topology: v5e:2x2
jax: 0.10.0
libtpu: 0.0.40
codegen_flags: <defaults>
</compile_context>

<pallas_src>
import functools

import jax
import jax.numpy as jnp
import numpy as np
from jax.experimental import pallas as pl
from jax.experimental.pallas import tpu as pltpu


# -----------------------------------------------------------------------------
# Fused Pallas kernel: all LSTM layers + residual + fc head, one invocation
# -----------------------------------------------------------------------------
def _fused_lstm_kernel(x_ref, *refs, B, T, D, H, L):
    """Whole LSTMModel forward in one kernel invocation (grid=()).

    x_ref : (T*B, D) time-major-flat input (row index = t*B + b)
    refs  : for each layer l: wih_l (Din,4H), whh_l (H,4H), b_l (1,4H)
            then wres (D,H), bres (1,H), wfc (H,O), bfc (1,O)
            then out_ref (B, O)
    Gate columns are pre-permuted (wrapper) to [i, f, o, g] so the sigmoid
    gates are contiguous lanes.
    """
    out_ref = refs[-1]
    wrefs = refs[:-1]
    layer_refs = [(wrefs[3 * l], wrefs[3 * l + 1], wrefs[3 * l + 2]) for l in range(L)]
    wres_ref, bres_ref, wfc_ref, bfc_ref = wrefs[3 * L:3 * L + 4]

    seq = x_ref[...]  # (T*B, Din) time-major-flat sequence fed to layer 0

    h_last = None
    for l in range(L):
        wih = layer_refs[l][0][...]   # (Din, 4H)
        whh = layer_refs[l][1][...]   # (H,   4H)
        bias = layer_refs[l][2][...]  # (1,   4H)

        # Hoisted input projection: ONE (T*B, Din) @ (Din, 4H) matmul + bias,
        # instead of T tiny M=B matmuls inside the recurrence.
        gx = jnp.dot(seq, wih, preferred_element_type=jnp.float32) + bias  # (T*B, 4H)

        h = jnp.zeros((B, H), jnp.float32)
        c = jnp.zeros((B, H), jnp.float32)
        keep_seq = (l + 1) < L  # sequence only needed as next layer's input
        outs = []
        # TODO(synk): for long sequences switch this static unroll to an
        # in-kernel lax.fori_loop with a VMEM scratch sequence buffer (keeps
        # trace size bounded); at small static T full unroll is fastest.
        for t in range(T):
            gx_t = gx[t * B:(t + 1) * B, :]  # contiguous (B, 4H)
            gates = gx_t + jnp.dot(h, whh, preferred_element_type=jnp.float32)
            # Columns are [i | f | o | g]: one sigmoid over 3H, one tanh over H.
            sig = jax.nn.sigmoid(gates[:, :3 * H])
            g_g = jnp.tanh(gates[:, 3 * H:])
            i_g = sig[:, 0 * H:1 * H]
            f_g = sig[:, 1 * H:2 * H]
            o_g = sig[:, 2 * H:3 * H]
            c = f_g * c + i_g * g_g
            h = o_g * jnp.tanh(c)
            if keep_seq:
                outs.append(h)
        h_last = h
        if keep_seq:
            seq = jnp.concatenate(outs, axis=0)  # (T*B, H), rows t*B + b

    # Residual head on the last timestep of the original input: contiguous rows.
    x_last = x_ref[(T - 1) * B:T * B, :]  # (B, D) == x[:, -1, :]
    res = (
        jnp.dot(x_last, wres_ref[...], preferred_element_type=jnp.float32)
        + bres_ref[...]
    )
    s = h_last + res
    out_ref[...] = (
        jnp.dot(s, wfc_ref[...], preferred_element_type=jnp.float32) + bfc_ref[...]
    )


# -----------------------------------------------------------------------------
# Wrapper
# -----------------------------------------------------------------------------
def _permute_gates(w, H):
    """Permute last-axis gate blocks from torch order [i,f,g,o] to [i,f,o,g]."""
    return jnp.concatenate(
        [w[..., :2 * H], w[..., 3 * H:4 * H], w[..., 2 * H:3 * H]], axis=-1
    )


def lstm_model_forward(params, x):
    """Pallas forward. x: (B, T, D) or (B, D) -> (B, output_dim)."""
    if x.ndim == 2:
        x = x[:, None, :]  # unsqueeze(1), matches PyTorch branch
    x = x.astype(jnp.float32)
    B, T, D = x.shape
    layers = params["lstm_layers"]
    L = len(layers)
    H = layers[0][1].shape[0]
    O = params["wfc_t"].shape[1]

    # Time-major-flat layout (row = t*B + b): every per-timestep slice inside
    # the kernel is contiguous. This wrapper transpose is tiny layout plumbing.
    x_tm = jnp.swapaxes(x, 0, 1).reshape(T * B, D)

    inputs = [x_tm]
    for (wih_t, whh_t, bias) in layers:
        inputs.extend(
            [_permute_gates(wih_t, H), _permute_gates(whh_t, H), _permute_gates(bias, H)]
        )
    inputs.extend([params["wres_t"], params["bres"], params["wfc_t"], params["bfc"]])

    kernel = functools.partial(_fused_lstm_kernel, B=B, T=T, D=D, H=H, L=L)
    vmem_spec = pl.BlockSpec(memory_space=pltpu.MemorySpace.VMEM)
    return pl.pallas_call(
        kernel,
        out_shape=jax.ShapeDtypeStruct((B, O), jnp.float32),
        in_specs=[vmem_spec] * len(inputs),
        out_specs=vmem_spec,
    )(*inputs)


# -----------------------------------------------------------------------------
# Deterministic parameter init (PyTorch-style uniform(-1/sqrt(H), 1/sqrt(H)))
# Stored in canonical torch gate order [i, f, g, o]; the wrapper permutes.
# -----------------------------------------------------------------------------
def init_params(key, input_dim, hidden_dim, layer_dim, output_dim):
    k = 1.0 / np.sqrt(hidden_dim)
    params = {"lstm_layers": []}
    for layer in range(layer_dim):
        d_in = input_dim if layer == 0 else hidden_dim
        key, k1, k2, k3, k4 = jax.random.split(key, 5)
        w_ih = jax.random.uniform(k1, (4 * hidden_dim, d_in), jnp.float32, -k, k)
        w_hh = jax.random.uniform(k2, (4 * hidden_dim, hidden_dim), jnp.float32, -k, k)
        b_ih = jax.random.uniform(k3, (4 * hidden_dim,), jnp.float32, -k, k)
        b_hh = jax.random.uniform(k4, (4 * hidden_dim,), jnp.float32, -k, k)
        params["lstm_layers"].append(
            (w_ih.T, w_hh.T, (b_ih + b_hh)[None, :])  # transposed for x @ W^T
        )
    kr = 1.0 / np.sqrt(input_dim)
    key, k1, k2 = jax.random.split(key, 3)
    w_res = jax.random.uniform(k1, (hidden_dim, input_dim), jnp.float32, -kr, kr)
    b_res = jax.random.uniform(k2, (hidden_dim,), jnp.float32, -kr, kr)
    kf = 1.0 / np.sqrt(hidden_dim)
    key, k1, k2 = jax.random.split(key, 3)
    w_fc = jax.random.uniform(k1, (output_dim, hidden_dim), jnp.float32, -kf, kf)
    b_fc = jax.random.uniform(k2, (output_dim,), jnp.float32, -kf, kf)
    params["wres_t"] = w_res.T
    params["bres"] = b_res[None, :]
    params["wfc_t"] = w_fc.T
    params["bfc"] = b_fc[None, :]
    return params


# -----------------------------------------------------------------------------
# Pure-JAX reference (torch gate order [i,f,g,o] — independent of the kernel's
# gate permutation, so a permutation bug would be caught here)
# -----------------------------------------------------------------------------
def lstm_model_reference(params, x):
    if x.ndim == 2:
        x = x[:, None, :]
    x = x.astype(jnp.float32)
    B, T, _ = x.shape
    h_seq = x
    for (wih_t, whh_t, bias) in params["lstm_layers"]:
        H = whh_t.shape[0]
        h = jnp.zeros((B, H), jnp.float32)
        c = jnp.zeros((B, H), jnp.float32)
        outs = []
        for t in range(T):
            gates = h_seq[:, t, :] @ wih_t + h @ whh_t + bias
            i_g = jax.nn.sigmoid(gates[:, 0 * H:1 * H])
            f_g = jax.nn.sigmoid(gates[:, 1 * H:2 * H])
            g_g = jnp.tanh(gates[:, 2 * H:3 * H])
            o_g = jax.nn.sigmoid(gates[:, 3 * H:4 * H])
            c = f_g * c + i_g * g_g
            h = o_g * jnp.tanh(c)
            outs.append(h)
        h_seq = jnp.stack(outs, axis=1)
    res = x[:, -1, :] @ params["wres_t"] + params["bres"]
    out = h_seq[:, -1, :] + res
    return out @ params["wfc_t"] + params["bfc"]


# -----------------------------------------------------------------------------
if __name__ == "__main__":
    input_dim, hidden_dim, layer_dim, output_dim = 16, 32, 2, 4
    B, T = 2, 8

    key = jax.random.PRNGKey(0)
    key, pkey, xkey = jax.random.split(key, 3)
    params = init_params(pkey, input_dim, hidden_dim, layer_dim, output_dim)
    x = jax.random.normal(xkey, (B, T, input_dim), jnp.float32)

    out = jax.block_until_ready(lstm_model_forward(params, x))
    ref = jax.block_until_ready(lstm_model_reference(params, x))

    np.testing.assert_allclose(np.asarray(out), np.asarray(ref), rtol=1e-5, atol=1e-5)
    assert out.shape == (B, output_dim)
    print("KERNEL_OK")
</pallas_src>

<mosaic_0001>
module attributes {stable_mosaic.version = 11 : i64} {
  func.func @_fused_lstm_kernel(%arg0: memref<16x16xf32, #tpu.memory_space<vmem>>, %arg1: memref<16x128xf32, #tpu.memory_space<vmem>>, %arg2: memref<32x128xf32, #tpu.memory_space<vmem>>, %arg3: memref<1x128xf32, #tpu.memory_space<vmem>>, %arg4: memref<32x128xf32, #tpu.memory_space<vmem>>, %arg5: memref<32x128xf32, #tpu.memory_space<vmem>>, %arg6: memref<1x128xf32, #tpu.memory_space<vmem>>, %arg7: memref<16x32xf32, #tpu.memory_space<vmem>>, %arg8: memref<1x32xf32, #tpu.memory_space<vmem>>, %arg9: memref<32x4xf32, #tpu.memory_space<vmem>>, %arg10: memref<1x4xf32, #tpu.memory_space<vmem>>, %arg11: memref<2x4xf32, #tpu.memory_space<vmem>>) attributes {dimension_semantics = [], scalar_prefetch = 0 : i64, scratch_operands = 0 : i64, tpu.core_type = #tpu.core_type<tc>} {
    %c0 = arith.constant 0 : index
    %c0_0 = arith.constant 0 : index
    %0 = vector.load %arg0[%c0, %c0_0] : memref<16x16xf32, #tpu.memory_space<vmem>>, vector<16x16xf32>
    %c0_1 = arith.constant 0 : index
    %c0_2 = arith.constant 0 : index
    %1 = vector.load %arg1[%c0_1, %c0_2] : memref<16x128xf32, #tpu.memory_space<vmem>>, vector<16x128xf32>
    %c0_3 = arith.constant 0 : index
    %c0_4 = arith.constant 0 : index
    %2 = vector.load %arg2[%c0_3, %c0_4] : memref<32x128xf32, #tpu.memory_space<vmem>>, vector<32x128xf32>
    %c0_5 = arith.constant 0 : index
    %c0_6 = arith.constant 0 : index
    %3 = vector.load %arg3[%c0_5, %c0_6] : memref<1x128xf32, #tpu.memory_space<vmem>>, vector<1x128xf32>
    %cst = arith.constant dense<0.000000e+00> : vector<16x128xf32>
    %4 = tpu.matmul %0, %1, %cst {dimension_numbers = #tpu.dot_dimension_numbers<[1], [0], [0], [1], [0, 0, 1, 1], [], []>} : vector<16x16xf32>, vector<16x128xf32>, vector<16x128xf32> -> vector<16x128xf32>
    %5 = vector.broadcast %3 : vector<1x128xf32> to vector<16x128xf32>
    %6 = arith.addf %4, %5 : vector<16x128xf32>
    %cst_7 = arith.constant 0.000000e+00 : f32
    %7 = vector.broadcast %cst_7 : f32 to vector<2x32xf32>
    %cst_8 = arith.constant 0.000000e+00 : f32
    %8 = vector.broadcast %cst_8 : f32 to vector<2x32xf32>
    %9 = vector.extract_strided_slice %6 {offsets = [0, 0], sizes = [2, 128], strides = [1, 1]} : vector<16x128xf32> to vector<2x128xf32>
    %cst_9 = arith.constant dense<0.000000e+00> : vector<2x128xf32>
    %10 = tpu.matmul %7, %2, %cst_9 {dimension_numbers = #tpu.dot_dimension_numbers<[1], [0], [0], [1], [0, 0, 1, 1], [], []>} : vector<2x32xf32>, vector<32x128xf32>, vector<2x128xf32> -> vector<2x128xf32>
    %11 = arith.addf %9, %10 : vector<2x128xf32>
    %12 = vector.extract_strided_slice %11 {offsets = [0, 0], sizes = [2, 96], strides = [1, 1]} : vector<2x128xf32> to vector<2x96xf32>
    %13 = arith.negf %12 : vector<2x96xf32>
    %14 = math.exp %13 : vector<2x96xf32>
    %cst_10 = arith.constant 1.000000e+00 : f32
    %15 = vector.broadcast %cst_10 : f32 to vector<2x96xf32>
    %16 = arith.addf %15, %14 : vector<2x96xf32>
    %17 = arith.divf %15, %16 : vector<2x96xf32>
    %18 = vector.extract_strided_slice %11 {offsets = [0, 96], sizes = [2, 32], strides = [1, 1]} : vector<2x128xf32> to vector<2x32xf32>
    %19 = math.tanh %18 : vector<2x32xf32>
    %20 = vector.extract_strided_slice %17 {offsets = [0, 0], sizes = [2, 32], strides = [1, 1]} : vector<2x96xf32> to vector<2x32xf32>
    %21 = vector.extract_strided_slice %17 {offsets = [0, 32], sizes = [2, 32], strides = [1, 1]} : vector<2x96xf32> to vector<2x32xf32>
    %22 = vector.extract_strided_slice %17 {offsets = [0, 64], sizes = [2, 32], strides = [1, 1]} : vector<2x96xf32> to vector<2x32xf32>
    %23 = arith.mulf %21, %8 : vector<2x32xf32>
    %24 = arith.mulf %20, %19 : vector<2x32xf32>
    %25 = arith.addf %23, %24 : vector<2x32xf32>
    %26 = math.tanh %25 : vector<2x32xf32>
    %27 = arith.mulf %22, %26 : vector<2x32xf32>
    %28 = vector.extract_strided_slice %6 {offsets = [2, 0], sizes = [2, 128], strides = [1, 1]} : vector<16x128xf32> to vector<2x128xf32>
    %cst_11 = arith.constant dense<0.000000e+00> : vector<2x128xf32>
    %29 = tpu.matmul %27, %2, %cst_11 {dimension_numbers = #tpu.dot_dimension_numbers<[1], [0], [0], [1], [0, 0, 1, 1], [], []>} : vector<2x32xf32>, vector<32x128xf32>, vector<2x128xf32> -> vector<2x128xf32>
    %30 = arith.addf %28, %29 : vector<2x128xf32>
    %31 = vector.extract_strided_slice %30 {offsets = [0, 0], sizes = [2, 96], strides = [1, 1]} : vector<2x128xf32> to vector<2x96xf32>
    %32 = arith.negf %31 : vector<2x96xf32>
    %33 = math.exp %32 : vector<2x96xf32>
    %cst_12 = arith.constant 1.000000e+00 : f32
    %34 = vector.broadcast %cst_12 : f32 to vector<2x96xf32>
    %35 = arith.addf %34, %33 : vector<2x96xf32>
    %36 = arith.divf %34, %35 : vector<2x96xf32>
    %37 = vector.extract_strided_slice %30 {offsets = [0, 96], sizes = [2, 32], strides = [1, 1]} : vector<2x128xf32> to vector<2x32xf32>
    %38 = math.tanh %37 : vector<2x32xf32>
    %39 = vector.extract_strided_slice %36 {offsets = [0, 0], sizes = [2, 32], strides = [1, 1]} : vector<2x96xf32> to vector<2x32xf32>
    %40 = vector.extract_strided_slice %36 {offsets = [0, 32], sizes = [2, 32], strides = [1, 1]} : vector<2x96xf32> to vector<2x32xf32>
    %41 = vector.extract_strided_slice %36 {offsets = [0, 64], sizes = [2, 32], strides = [1, 1]} : vector<2x96xf32> to vector<2x32xf32>
    %42 = arith.mulf %40, %25 : vector<2x32xf32>
    %43 = arith.mulf %39, %38 : vector<2x32xf32>
    %44 = arith.addf %42, %43 : vector<2x32xf32>
    %45 = math.tanh %44 : vector<2x32xf32>
    %46 = arith.mulf %41, %45 : vector<2x32xf32>
    %47 = vector.extract_strided_slice %6 {offsets = [4, 0], sizes = [2, 128], strides = [1, 1]} : vector<16x128xf32> to vector<2x128xf32>
    %cst_13 = arith.constant dense<0.000000e+00> : vector<2x128xf32>
    %48 = tpu.matmul %46, %2, %cst_13 {dimension_numbers = #tpu.dot_dimension_numbers<[1], [0], [0], [1], [0, 0, 1, 1], [], []>} : vector<2x32xf32>, vector<32x128xf32>, vector<2x128xf32> -> vector<2x128xf32>
    %49 = arith.addf %47, %48 : vector<2x128xf32>
    %50 = vector.extract_strided_slice %49 {offsets = [0, 0], sizes = [2, 96], strides = [1, 1]} : vector<2x128xf32> to vector<2x96xf32>
    %51 = arith.negf %50 : vector<2x96xf32>
    %52 = math.exp %51 : vector<2x96xf32>
    %cst_14 = arith.constant 1.000000e+00 : f32
    %53 = vector.broadcast %cst_14 : f32 to vector<2x96xf32>
    %54 = arith.addf %53, %52 : vector<2x96xf32>
    %55 = arith.divf %53, %54 : vector<2x96xf32>
    %56 = vector.extract_strided_slice %49 {offsets = [0, 96], sizes = [2, 32], strides = [1, 1]} : vector<2x128xf32> to vector<2x32xf32>
    %57 = math.tanh %56 : vector<2x32xf32>
    %58 = vector.extract_strided_slice %55 {offsets = [0, 0], sizes = [2, 32], strides = [1, 1]} : vector<2x96xf32> to vector<2x32xf32>
    %59 = vector.extract_strided_slice %55 {offsets = [0, 32], sizes = [2, 32], strides = [1, 1]} : vector<2x96xf32> to vector<2x32xf32>
    %60 = vector.extract_strided_slice %55 {offsets = [0, 64], sizes = [2, 32], strides = [1, 1]} : vector<2x96xf32> to vector<2x32xf32>
    %61 = arith.mulf %59, %44 : vector<2x32xf32>
    %62 = arith.mulf %58, %57 : vector<2x32xf32>
    %63 = arith.addf %61, %62 : vector<2x32xf32>
    %64 = math.tanh %63 : vector<2x32xf32>
    %65 = arith.mulf %60, %64 : vector<2x32xf32>
    %66 = vector.extract_strided_slice %6 {offsets = [6, 0], sizes = [2, 128], strides = [1, 1]} : vector<16x128xf32> to vector<2x128xf32>
    %cst_15 = arith.constant dense<0.000000e+00> : vector<2x128xf32>
    %67 = tpu.matmul %65, %2, %cst_15 {dimension_numbers = #tpu.dot_dimension_numbers<[1], [0], [0], [1], [0, 0, 1, 1], [], []>} : vector<2x32xf32>, vector<32x128xf32>, vector<2x128xf32> -> vector<2x128xf32>
    %68 = arith.addf %66, %67 : vector<2x128xf32>
    %69 = vector.extract_strided_slice %68 {offsets = [0, 0], sizes = [2, 96], strides = [1, 1]} : vector<2x128xf32> to vector<2x96xf32>
    %70 = arith.negf %69 : vector<2x96xf32>
    %71 = math.exp %70 : vector<2x96xf32>
    %cst_16 = arith.constant 1.000000e+00 : f32
    %72 = vector.broadcast %cst_16 : f32 to vector<2x96xf32>
    %73 = arith.addf %72, %71 : vector<2x96xf32>
    %74 = arith.divf %72, %73 : vector<2x96xf32>
    %75 = vector.extract_strided_slice %68 {offsets = [0, 96], sizes = [2, 32], strides = [1, 1]} : vector<2x128xf32> to vector<2x32xf32>
    %76 = math.tanh %75 : vector<2x32xf32>
    %77 = vector.extract_strided_slice %74 {offsets = [0, 0], sizes = [2, 32], strides = [1, 1]} : vector<2x96xf32> to vector<2x32xf32>
    %78 = vector.extract_strided_slice %74 {offsets = [0, 32], sizes = [2, 32], strides = [1, 1]} : vector<2x96xf32> to vector<2x32xf32>
    %79 = vector.extract_strided_slice %74 {offsets = [0, 64], sizes = [2, 32], strides = [1, 1]} : vector<2x96xf32> to vector<2x32xf32>
    %80 = arith.mulf %78, %63 : vector<2x32xf32>
    %81 = arith.mulf %77, %76 : vector<2x32xf32>
    %82 = arith.addf %80, %81 : vector<2x32xf32>
    %83 = math.tanh %82 : vector<2x32xf32>
    %84 = arith.mulf %79, %83 : vector<2x32xf32>
    %85 = vector.extract_strided_slice %6 {offsets = [8, 0], sizes = [2, 128], strides = [1, 1]} : vector<16x128xf32> to vector<2x128xf32>
    %cst_17 = arith.constant dense<0.000000e+00> : vector<2x128xf32>
    %86 = tpu.matmul %84, %2, %cst_17 {dimension_numbers = #tpu.dot_dimension_numbers<[1], [0], [0], [1], [0, 0, 1, 1], [], []>} : vector<2x32xf32>, vector<32x128xf32>, vector<2x128xf32> -> vector<2x128xf32>
    %87 = arith.addf %85, %86 : vector<2x128xf32>
    %88 = vector.extract_strided_slice %87 {offsets = [0, 0], sizes = [2, 96], strides = [1, 1]} : vector<2x128xf32> to vector<2x96xf32>
    %89 = arith.negf %88 : vector<2x96xf32>
    %90 = math.exp %89 : vector<2x96xf32>
    %cst_18 = arith.constant 1.000000e+00 : f32
    %91 = vector.broadcast %cst_18 : f32 to vector<2x96xf32>
    %92 = arith.addf %91, %90 : vector<2x96xf32>
    %93 = arith.divf %91, %92 : vector<2x96xf32>
    %94 = vector.extract_strided_slice %87 {offsets = [0, 96], sizes = [2, 32], strides = [1, 1]} : vector<2x128xf32> to vector<2x32xf32>
    %95 = math.tanh %94 : vector<2x32xf32>
    %96 = vector.extract_strided_slice %93 {offsets = [0, 0], sizes = [2, 32], strides = [1, 1]} : vector<2x96xf32> to vector<2x32xf32>
    %97 = vector.extract_strided_slice %93 {offsets = [0, 32], sizes = [2, 32], strides = [1, 1]} : vector<2x96xf32> to vector<2x32xf32>
    %98 = vector.extract_strided_slice %93 {offsets = [0, 64], sizes = [2, 32], strides = [1, 1]} : vector<2x96xf32> to vector<2x32xf32>
    %99 = arith.mulf %97, %82 : vector<2x32xf32>
    %100 = arith.mulf %96, %95 : vector<2x32xf32>
    %101 = arith.addf %99, %100 : vector<2x32xf32>
    %102 = math.tanh %101 : vector<2x32xf32>
    %103 = arith.mulf %98, %102 : vector<2x32xf32>
    %104 = vector.extract_strided_slice %6 {offsets = [10, 0], sizes = [2, 128], strides = [1, 1]} : vector<16x128xf32> to vector<2x128xf32>
    %cst_19 = arith.constant dense<0.000000e+00> : vector<2x128xf32>
    %105 = tpu.matmul %103, %2, %cst_19 {dimension_numbers = #tpu.dot_dimension_numbers<[1], [0], [0], [1], [0, 0, 1, 1], [], []>} : vector<2x32xf32>, vector<32x128xf32>, vector<2x128xf32> -> vector<2x128xf32>
    %106 = arith.addf %104, %105 : vector<2x128xf32>
    %107 = vector.extract_strided_slice %106 {offsets = [0, 0], sizes = [2, 96], strides = [1, 1]} : vector<2x128xf32> to vector<2x96xf32>
    %108 = arith.negf %107 : vector<2x96xf32>
    %109 = math.exp %108 : vector<2x96xf32>
    %cst_20 = arith.constant 1.000000e+00 : f32
    %110 = vector.broadcast %cst_20 : f32 to vector<2x96xf32>
    %111 = arith.addf %110, %109 : vector<2x96xf32>
    %112 = arith.divf %110, %111 : vector<2x96xf32>
    %113 = vector.extract_strided_slice %106 {offsets = [0, 96], sizes = [2, 32], strides = [1, 1]} : vector<2x128xf32> to vector<2x32xf32>
    %114 = math.tanh %113 : vector<2x32xf32>
    %115 = vector.extract_strided_slice %112 {offsets = [0, 0], sizes = [2, 32], strides = [1, 1]} : vector<2x96xf32> to vector<2x32xf32>
    %116 = vector.extract_strided_slice %112 {offsets = [0, 32], sizes = [2, 32], strides = [1, 1]} : vector<2x96xf32> to vector<2x32xf32>
    %117 = vector.extract_strided_slice %112 {offsets = [0, 64], sizes = [2, 32], strides = [1, 1]} : vector<2x96xf32> to vector<2x32xf32>
    %118 = arith.mulf %116, %101 : vector<2x32xf32>
    %119 = arith.mulf %115, %114 : vector<2x32xf32>
    %120 = arith.addf %118, %119 : vector<2x32xf32>
    %121 = math.tanh %120 : vector<2x32xf32>
    %122 = arith.mulf %117, %121 : vector<2x32xf32>
    %123 = vector.extract_strided_slice %6 {offsets = [12, 0], sizes = [2, 128], strides = [1, 1]} : vector<16x128xf32> to vector<2x128xf32>
    %cst_21 = arith.constant dense<0.000000e+00> : vector<2x128xf32>
    %124 = tpu.matmul %122, %2, %cst_21 {dimension_numbers = #tpu.dot_dimension_numbers<[1], [0], [0], [1], [0, 0, 1, 1], [], []>} : vector<2x32xf32>, vector<32x128xf32>, vector<2x128xf32> -> vector<2x128xf32>
    %125 = arith.addf %123, %124 : vector<2x128xf32>
    %126 = vector.extract_strided_slice %125 {offsets = [0, 0], sizes = [2, 96], strides = [1, 1]} : vector<2x128xf32> to vector<2x96xf32>
    %127 = arith.negf %126 : vector<2x96xf32>
    %128 = math.exp %127 : vector<2x96xf32>
    %cst_22 = arith.constant 1.000000e+00 : f32
    %129 = vector.broadcast %cst_22 : f32 to vector<2x96xf32>
    %130 = arith.addf %129, %128 : vector<2x96xf32>
    %131 = arith.divf %129, %130 : vector<2x96xf32>
    %132 = vector.extract_strided_slice %125 {offsets = [0, 96], sizes = [2, 32], strides = [1, 1]} : vector<2x128xf32> to vector<2x32xf32>
    %133 = math.tanh %132 : vector<2x32xf32>
    %134 = vector.extract_strided_slice %131 {offsets = [0, 0], sizes = [2, 32], strides = [1, 1]} : vector<2x96xf32> to vector<2x32xf32>
    %135 = vector.extract_strided_slice %131 {offsets = [0, 32], sizes = [2, 32], strides = [1, 1]} : vector<2x96xf32> to vector<2x32xf32>
    %136 = vector.extract_strided_slice %131 {offsets = [0, 64], sizes = [2, 32], strides = [1, 1]} : vector<2x96xf32> to vector<2x32xf32>
    %137 = arith.mulf %135, %120 : vector<2x32xf32>
    %138 = arith.mulf %134, %133 : vector<2x32xf32>
    %139 = arith.addf %137, %138 : vector<2x32xf32>
    %140 = math.tanh %139 : vector<2x32xf32>
    %141 = arith.mulf %136, %140 : vector<2x32xf32>
    %142 = vector.extract_strided_slice %6 {offsets = [14, 0], sizes = [2, 128], strides = [1, 1]} : vector<16x128xf32> to vector<2x128xf32>
    %cst_23 = arith.constant dense<0.000000e+00> : vector<2x128xf32>
    %143 = tpu.matmul %141, %2, %cst_23 {dimension_numbers = #tpu.dot_dimension_numbers<[1], [0], [0], [1], [0, 0, 1, 1], [], []>} : vector<2x32xf32>, vector<32x128xf32>, vector<2x128xf32> -> vector<2x128xf32>
    %144 = arith.addf %142, %143 : vector<2x128xf32>
    %145 = vector.extract_strided_slice %144 {offsets = [0, 0], sizes = [2, 96], strides = [1, 1]} : vector<2x128xf32> to vector<2x96xf32>
    %146 = arith.negf %145 : vector<2x96xf32>
    %147 = math.exp %146 : vector<2x96xf32>
    %cst_24 = arith.constant 1.000000e+00 : f32
    %148 = vector.broadcast %cst_24 : f32 to vector<2x96xf32>
    %149 = arith.addf %148, %147 : vector<2x96xf32>
    %150 = arith.divf %148, %149 : vector<2x96xf32>
    %151 = vector.extract_strided_slice %144 {offsets = [0, 96], sizes = [2, 32], strides = [1, 1]} : vector<2x128xf32> to vector<2x32xf32>
    %152 = math.tanh %151 : vector<2x32xf32>
    %153 = vector.extract_strided_slice %150 {offsets = [0, 0], sizes = [2, 32], strides = [1, 1]} : vector<2x96xf32> to vector<2x32xf32>
    %154 = vector.extract_strided_slice %150 {offsets = [0, 32], sizes = [2, 32], strides = [1, 1]} : vector<2x96xf32> to vector<2x32xf32>
    %155 = vector.extract_strided_slice %150 {offsets = [0, 64], sizes = [2, 32], strides = [1, 1]} : vector<2x96xf32> to vector<2x32xf32>
    %156 = arith.mulf %154, %139 : vector<2x32xf32>
    %157 = arith.mulf %153, %152 : vector<2x32xf32>
    %158 = arith.addf %156, %157 : vector<2x32xf32>
    %159 = math.tanh %158 : vector<2x32xf32>
    %160 = arith.mulf %155, %159 : vector<2x32xf32>
    %161 = tpu.concatenate %27, %46, %65, %84, %103, %122, %141, %160 in 0 : vector<2x32xf32>, vector<2x32xf32>, vector<2x32xf32>, vector<2x32xf32>, vector<2x32xf32>, vector<2x32xf32>, vector<2x32xf32>, vector<2x32xf32> -> vector<16x32xf32>
    %c0_25 = arith.constant 0 : index
    %c0_26 = arith.constant 0 : index
    %162 = vector.load %arg4[%c0_25, %c0_26] : memref<32x128xf32, #tpu.memory_space<vmem>>, vector<32x128xf32>
    %c0_27 = arith.constant 0 : index
    %c0_28 = arith.constant 0 : index
    %163 = vector.load %arg5[%c0_27, %c0_28] : memref<32x128xf32, #tpu.memory_space<vmem>>, vector<32x128xf32>
    %c0_29 = arith.constant 0 : index
    %c0_30 = arith.constant 0 : index
    %164 = vector.load %arg6[%c0_29, %c0_30] : memref<1x128xf32, #tpu.memory_space<vmem>>, vector<1x128xf32>
    %cst_31 = arith.constant dense<0.000000e+00> : vector<16x128xf32>
    %165 = tpu.matmul %161, %162, %cst_31 {dimension_numbers = #tpu.dot_dimension_numbers<[1], [0], [0], [1], [0, 0, 1, 1], [], []>} : vector<16x32xf32>, vector<32x128xf32>, vector<16x128xf32> -> vector<16x128xf32>
    %166 = vector.broadcast %164 : vector<1x128xf32> to vector<16x128xf32>
    %167 = arith.addf %165, %166 : vector<16x128xf32>
    %cst_32 = arith.constant 0.000000e+00 : f32
    %168 = vector.broadcast %cst_32 : f32 to vector<2x32xf32>
    %cst_33 = arith.constant 0.000000e+00 : f32
    %169 = vector.broadcast %cst_33 : f32 to vector<2x32xf32>
    %170 = vector.extract_strided_slice %167 {offsets = [0, 0], sizes = [2, 128], strides = [1, 1]} : vector<16x128xf32> to vector<2x128xf32>
    %cst_34 = arith.constant dense<0.000000e+00> : vector<2x128xf32>
    %171 = tpu.matmul %168, %163, %cst_34 {dimension_numbers = #tpu.dot_dimension_numbers<[1], [0], [0], [1], [0, 0, 1, 1], [], []>} : vector<2x32xf32>, vector<32x128xf32>, vector<2x128xf32> -> vector<2x128xf32>
    %172 = arith.addf %170, %171 : vector<2x128xf32>
    %173 = vector.extract_strided_slice %172 {offsets = [0, 0], sizes = [2, 96], strides = [1, 1]} : vector<2x128xf32> to vector<2x96xf32>
    %174 = arith.negf %173 : vector<2x96xf32>
    %175 = math.exp %174 : vector<2x96xf32>
    %cst_35 = arith.constant 1.000000e+00 : f32
    %176 = vector.broadcast %cst_35 : f32 to vector<2x96xf32>
    %177 = arith.addf %176, %175 : vector<2x96xf32>
    %178 = arith.divf %176, %177 : vector<2x96xf32>
    %179 = vector.extract_strided_slice %172 {offsets = [0, 96], sizes = [2, 32], strides = [1, 1]} : vector<2x128xf32> to vector<2x32xf32>
    %180 = math.tanh %179 : vector<2x32xf32>
    %181 = vector.extract_strided_slice %178 {offsets = [0, 0], sizes = [2, 32], strides = [1, 1]} : vector<2x96xf32> to vector<2x32xf32>
    %182 = vector.extract_strided_slice %178 {offsets = [0, 32], sizes = [2, 32], strides = [1, 1]} : vector<2x96xf32> to vector<2x32xf32>
    %183 = vector.extract_strided_slice %178 {offsets = [0, 64], sizes = [2, 32], strides = [1, 1]} : vector<2x96xf32> to vector<2x32xf32>
    %184 = arith.mulf %182, %169 : vector<2x32xf32>
    %185 = arith.mulf %181, %180 : vector<2x32xf32>
    %186 = arith.addf %184, %185 : vector<2x32xf32>
    %187 = math.tanh %186 : vector<2x32xf32>
    %188 = arith.mulf %183, %187 : vector<2x32xf32>
    %189 = vector.extract_strided_slice %167 {offsets = [2, 0], sizes = [2, 128], strides = [1, 1]} : vector<16x128xf32> to vector<2x128xf32>
    %cst_36 = arith.constant dense<0.000000e+00> : vector<2x128xf32>
    %190 = tpu.matmul %188, %163, %cst_36 {dimension_numbers = #tpu.dot_dimension_numbers<[1], [0], [0], [1], [0, 0, 1, 1], [], []>} : vector<2x32xf32>, vector<32x128xf32>, vector<2x128xf32> -> vector<2x128xf32>
    %191 = arith.addf %189, %190 : vector<2x128xf32>
    %192 = vector.extract_strided_slice %191 {offsets = [0, 0], sizes = [2, 96], strides = [1, 1]} : vector<2x128xf32> to vector<2x96xf32>
    %193 = arith.negf %192 : vector<2x96xf32>
    %194 = math.exp %193 : vector<2x96xf32>
    %cst_37 = arith.constant 1.000000e+00 : f32
    %195 = vector.broadcast %cst_37 : f32 to vector<2x96xf32>
    %196 = arith.addf %195, %194 : vector<2x96xf32>
    %197 = arith.divf %195, %196 : vector<2x96xf32>
    %198 = vector.extract_strided_slice %191 {offsets = [0, 96], sizes = [2, 32], strides = [1, 1]} : vector<2x128xf32> to vector<2x32xf32>
    %199 = math.tanh %198 : vector<2x32xf32>
    %200 = vector.extract_strided_slice %197 {offsets = [0, 0], sizes = [2, 32], strides = [1, 1]} : vector<2x96xf32> to vector<2x32xf32>
    %201 = vector.extract_strided_slice %197 {offsets = [0, 32], sizes = [2, 32], strides = [1, 1]} : vector<2x96xf32> to vector<2x32xf32>
    %202 = vector.extract_strided_slice %197 {offsets = [0, 64], sizes = [2, 32], strides = [1, 1]} : vector<2x96xf32> to vector<2x32xf32>
    %203 = arith.mulf %201, %186 : vector<2x32xf32>
    %204 = arith.mulf %200, %199 : vector<2x32xf32>
    %205 = arith.addf %203, %204 : vector<2x32xf32>
    %206 = math.tanh %205 : vector<2x32xf32>
    %207 = arith.mulf %202, %206 : vector<2x32xf32>
    %208 = vector.extract_strided_slice %167 {offsets = [4, 0], sizes = [2, 128], strides = [1, 1]} : vector<16x128xf32> to vector<2x128xf32>
    %cst_38 = arith.constant dense<0.000000e+00> : vector<2x128xf32>
    %209 = tpu.matmul %207, %163, %cst_38 {dimension_numbers = #tpu.dot_dimension_numbers<[1], [0], [0], [1], [0, 0, 1, 1], [], []>} : vector<2x32xf32>, vector<32x128xf32>, vector<2x128xf32> -> vector<2x128xf32>
    %210 = arith.addf %208, %209 : vector<2x128xf32>
    %211 = vector.extract_strided_slice %210 {offsets = [0, 0], sizes = [2, 96], strides = [1, 1]} : vector<2x128xf32> to vector<2x96xf32>
    %212 = arith.negf %211 : vector<2x96xf32>
    %213 = math.exp %212 : vector<2x96xf32>
    %cst_39 = arith.constant 1.000000e+00 : f32
    %214 = vector.broadcast %cst_39 : f32 to vector<2x96xf32>
    %215 = arith.addf %214, %213 : vector<2x96xf32>
    %216 = arith.divf %214, %215 : vector<2x96xf32>
    %217 = vector.extract_strided_slice %210 {offsets = [0, 96], sizes = [2, 32], strides = [1, 1]} : vector<2x128xf32> to vector<2x32xf32>
    %218 = math.tanh %217 : vector<2x32xf32>
    %219 = vector.extract_strided_slice %216 {offsets = [0, 0], sizes = [2, 32], strides = [1, 1]} : vector<2x96xf32> to vector<2x32xf32>
    %220 = vector.extract_strided_slice %216 {offsets = [0, 32], sizes = [2, 32], strides = [1, 1]} : vector<2x96xf32> to vector<2x32xf32>
    %221 = vector.extract_strided_slice %216 {offsets = [0, 64], sizes = [2, 32], strides = [1, 1]} : vector<2x96xf32> to vector<2x32xf32>
    %222 = arith.mulf %220, %205 : vector<2x32xf32>
    %223 = arith.mulf %219, %218 : vector<2x32xf32>
    %224 = arith.addf %222, %223 : vector<2x32xf32>
    %225 = math.tanh %224 : vector<2x32xf32>
    %226 = arith.mulf %221, %225 : vector<2x32xf32>
    %227 = vector.extract_strided_slice %167 {offsets = [6, 0], sizes = [2, 128], strides = [1, 1]} : vector<16x128xf32> to vector<2x128xf32>
    %cst_40 = arith.constant dense<0.000000e+00> : vector<2x128xf32>
    %228 = tpu.matmul %226, %163, %cst_40 {dimension_numbers = #tpu.dot_dimension_numbers<[1], [0], [0], [1], [0, 0, 1, 1], [], []>} : vector<2x32xf32>, vector<32x128xf32>, vector<2x128xf32> -> vector<2x128xf32>
    %229 = arith.addf %227, %228 : vector<2x128xf32>
    %230 = vector.extract_strided_slice %229 {offsets = [0, 0], sizes = [2, 96], strides = [1, 1]} : vector<2x128xf32> to vector<2x96xf32>
    %231 = arith.negf %230 : vector<2x96xf32>
    %232 = math.exp %231 : vector<2x96xf32>
    %cst_41 = arith.constant 1.000000e+00 : f32
    %233 = vector.broadcast %cst_41 : f32 to vector<2x96xf32>
    %234 = arith.addf %233, %232 : vector<2x96xf32>
    %235 = arith.divf %233, %234 : vector<2x96xf32>
    %236 = vector.extract_strided_slice %229 {offsets = [0, 96], sizes = [2, 32], strides = [1, 1]} : vector<2x128xf32> to vector<2x32xf32>
    %237 = math.tanh %236 : vector<2x32xf32>
    %238 = vector.extract_strided_slice %235 {offsets = [0, 0], sizes = [2, 32], strides = [1, 1]} : vector<2x96xf32> to vector<2x32xf32>
    %239 = vector.extract_strided_slice %235 {offsets = [0, 32], sizes = [2, 32], strides = [1, 1]} : vector<2x96xf32> to vector<2x32xf32>
    %240 = vector.extract_strided_slice %235 {offsets = [0, 64], sizes = [2, 32], strides = [1, 1]} : vector<2x96xf32> to vector<2x32xf32>
    %241 = arith.mulf %239, %224 : vector<2x32xf32>
    %242 = arith.mulf %238, %237 : vector<2x32xf32>
    %243 = arith.addf %241, %242 : vector<2x32xf32>
    %244 = math.tanh %243 : vector<2x32xf32>
    %245 = arith.mulf %240, %244 : vector<2x32xf32>
    %246 = vector.extract_strided_slice %167 {offsets = [8, 0], sizes = [2, 128], strides = [1, 1]} : vector<16x128xf32> to vector<2x128xf32>
    %cst_42 = arith.constant dense<0.000000e+00> : vector<2x128xf32>
    %247 = tpu.matmul %245, %163, %cst_42 {dimension_numbers = #tpu.dot_dimension_numbers<[1], [0], [0], [1], [0, 0, 1, 1], [], []>} : vector<2x32xf32>, vector<32x128xf32>, vector<2x128xf32> -> vector<2x128xf32>
    %248 = arith.addf %246, %247 : vector<2x128xf32>
    %249 = vector.extract_strided_slice %248 {offsets = [0, 0], sizes = [2, 96], strides = [1, 1]} : vector<2x128xf32> to vector<2x96xf32>
    %250 = arith.negf %249 : vector<2x96xf32>
    %251 = math.exp %250 : vector<2x96xf32>
    %cst_43 = arith.constant 1.000000e+00 : f32
    %252 = vector.broadcast %cst_43 : f32 to vector<2x96xf32>
    %253 = arith.addf %252, %251 : vector<2x96xf32>
    %254 = arith.divf %252, %253 : vector<2x96xf32>
    %255 = vector.extract_strided_slice %248 {offsets = [0, 96], sizes = [2, 32], strides = [1, 1]} : vector<2x128xf32> to vector<2x32xf32>
    %256 = math.tanh %255 : vector<2x32xf32>
    %257 = vector.extract_strided_slice %254 {offsets = [0, 0], sizes = [2, 32], strides = [1, 1]} : vector<2x96xf32> to vector<2x32xf32>
    %258 = vector.extract_strided_slice %254 {offsets = [0, 32], sizes = [2, 32], strides = [1, 1]} : vector<2x96xf32> to vector<2x32xf32>
    %259 = vector.extract_strided_slice %254 {offsets = [0, 64], sizes = [2, 32], strides = [1, 1]} : vector<2x96xf32> to vector<2x32xf32>
    %260 = arith.mulf %258, %243 : vector<2x32xf32>
    %261 = arith.mulf %257, %256 : vector<2x32xf32>
    %262 = arith.addf %260, %261 : vector<2x32xf32>
    %263 = math.tanh %262 : vector<2x32xf32>
    %264 = arith.mulf %259, %263 : vector<2x32xf32>
    %265 = vector.extract_strided_slice %167 {offsets = [10, 0], sizes = [2, 128], strides = [1, 1]} : vector<16x128xf32> to vector<2x128xf32>
    %cst_44 = arith.constant dense<0.000000e+00> : vector<2x128xf32>
    %266 = tpu.matmul %264, %163, %cst_44 {dimension_numbers = #tpu.dot_dimension_numbers<[1], [0], [0], [1], [0, 0, 1, 1], [], []>} : vector<2x32xf32>, vector<32x128xf32>, vector<2x128xf32> -> vector<2x128xf32>
    %267 = arith.addf %265, %266 : vector<2x128xf32>
    %268 = vector.extract_strided_slice %267 {offsets = [0, 0], sizes = [2, 96], strides = [1, 1]} : vector<2x128xf32> to vector<2x96xf32>
    %269 = arith.negf %268 : vector<2x96xf32>
    %270 = math.exp %269 : vector<2x96xf32>
    %cst_45 = arith.constant 1.000000e+00 : f32
    %271 = vector.broadcast %cst_45 : f32 to vector<2x96xf32>
    %272 = arith.addf %271, %270 : vector<2x96xf32>
    %273 = arith.divf %271, %272 : vector<2x96xf32>
    %274 = vector.extract_strided_slice %267 {offsets = [0, 96], sizes = [2, 32], strides = [1, 1]} : vector<2x128xf32> to vector<2x32xf32>
    %275 = math.tanh %274 : vector<2x32xf32>
    %276 = vector.extract_strided_slice %273 {offsets = [0, 0], sizes = [2, 32], strides = [1, 1]} : vector<2x96xf32> to vector<2x32xf32>
    %277 = vector.extract_strided_slice %273 {offsets = [0, 32], sizes = [2, 32], strides = [1, 1]} : vector<2x96xf32> to vector<2x32xf32>
    %278 = vector.extract_strided_slice %273 {offsets = [0, 64], sizes = [2, 32], strides = [1, 1]} : vector<2x96xf32> to vector<2x32xf32>
    %279 = arith.mulf %277, %262 : vector<2x32xf32>
    %280 = arith.mulf %276, %275 : vector<2x32xf32>
    %281 = arith.addf %279, %280 : vector<2x32xf32>
    %282 = math.tanh %281 : vector<2x32xf32>
    %283 = arith.mulf %278, %282 : vector<2x32xf32>
    %284 = vector.extract_strided_slice %167 {offsets = [12, 0], sizes = [2, 128], strides = [1, 1]} : vector<16x128xf32> to vector<2x128xf32>
    %cst_46 = arith.constant dense<0.000000e+00> : vector<2x128xf32>
    %285 = tpu.matmul %283, %163, %cst_46 {dimension_numbers = #tpu.dot_dimension_numbers<[1], [0], [0], [1], [0, 0, 1, 1], [], []>} : vector<2x32xf32>, vector<32x128xf32>, vector<2x128xf32> -> vector<2x128xf32>
    %286 = arith.addf %284, %285 : vector<2x128xf32>
    %287 = vector.extract_strided_slice %286 {offsets = [0, 0], sizes = [2, 96], strides = [1, 1]} : vector<2x128xf32> to vector<2x96xf32>
    %288 = arith.negf %287 : vector<2x96xf32>
    %289 = math.exp %288 : vector<2x96xf32>
    %cst_47 = arith.constant 1.000000e+00 : f32
    %290 = vector.broadcast %cst_47 : f32 to vector<2x96xf32>
    %291 = arith.addf %290, %289 : vector<2x96xf32>
    %292 = arith.divf %290, %291 : vector<2x96xf32>
    %293 = vector.extract_strided_slice %286 {offsets = [0, 96], sizes = [2, 32], strides = [1, 1]} : vector<2x128xf32> to vector<2x32xf32>
    %294 = math.tanh %293 : vector<2x32xf32>
    %295 = vector.extract_strided_slice %292 {offsets = [0, 0], sizes = [2, 32], strides = [1, 1]} : vector<2x96xf32> to vector<2x32xf32>
    %296 = vector.extract_strided_slice %292 {offsets = [0, 32], sizes = [2, 32], strides = [1, 1]} : vector<2x96xf32> to vector<2x32xf32>
    %297 = vector.extract_strided_slice %292 {offsets = [0, 64], sizes = [2, 32], strides = [1, 1]} : vector<2x96xf32> to vector<2x32xf32>
    %298 = arith.mulf %296, %281 : vector<2x32xf32>
    %299 = arith.mulf %295, %294 : vector<2x32xf32>
    %300 = arith.addf %298, %299 : vector<2x32xf32>
    %301 = math.tanh %300 : vector<2x32xf32>
    %302 = arith.mulf %297, %301 : vector<2x32xf32>
    %303 = vector.extract_strided_slice %167 {offsets = [14, 0], sizes = [2, 128], strides = [1, 1]} : vector<16x128xf32> to vector<2x128xf32>
    %cst_48 = arith.constant dense<0.000000e+00> : vector<2x128xf32>
    %304 = tpu.matmul %302, %163, %cst_48 {dimension_numbers = #tpu.dot_dimension_numbers<[1], [0], [0], [1], [0, 0, 1, 1], [], []>} : vector<2x32xf32>, vector<32x128xf32>, vector<2x128xf32> -> vector<2x128xf32>
    %305 = arith.addf %303, %304 : vector<2x128xf32>
    %306 = vector.extract_strided_slice %305 {offsets = [0, 0], sizes = [2, 96], strides = [1, 1]} : vector<2x128xf32> to vector<2x96xf32>
    %307 = arith.negf %306 : vector<2x96xf32>
    %308 = math.exp %307 : vector<2x96xf32>
    %cst_49 = arith.constant 1.000000e+00 : f32
    %309 = vector.broadcast %cst_49 : f32 to vector<2x96xf32>
    %310 = arith.addf %309, %308 : vector<2x96xf32>
    %311 = arith.divf %309, %310 : vector<2x96xf32>
    %312 = vector.extract_strided_slice %305 {offsets = [0, 96], sizes = [2, 32], strides = [1, 1]} : vector<2x128xf32> to vector<2x32xf32>
    %313 = math.tanh %312 : vector<2x32xf32>
    %314 = vector.extract_strided_slice %311 {offsets = [0, 0], sizes = [2, 32], strides = [1, 1]} : vector<2x96xf32> to vector<2x32xf32>
    %315 = vector.extract_strided_slice %311 {offsets = [0, 32], sizes = [2, 32], strides = [1, 1]} : vector<2x96xf32> to vector<2x32xf32>
    %316 = vector.extract_strided_slice %311 {offsets = [0, 64], sizes = [2, 32], strides = [1, 1]} : vector<2x96xf32> to vector<2x32xf32>
    %317 = arith.mulf %315, %300 : vector<2x32xf32>
    %318 = arith.mulf %314, %313 : vector<2x32xf32>
    %319 = arith.addf %317, %318 : vector<2x32xf32>
    %320 = math.tanh %319 : vector<2x32xf32>
    %321 = arith.mulf %316, %320 : vector<2x32xf32>
    %c14 = arith.constant 14 : index
    %c0_50 = arith.constant 0 : index
    %322 = vector.load %arg0[%c14, %c0_50] : memref<16x16xf32, #tpu.memory_space<vmem>>, vector<2x16xf32>
    %c0_51 = arith.constant 0 : index
    %c0_52 = arith.constant 0 : index
    %323 = vector.load %arg7[%c0_51, %c0_52] : memref<16x32xf32, #tpu.memory_space<vmem>>, vector<16x32xf32>
    %cst_53 = arith.constant dense<0.000000e+00> : vector<2x32xf32>
    %324 = tpu.matmul %322, %323, %cst_53 {dimension_numbers = #tpu.dot_dimension_numbers<[1], [0], [0], [1], [0, 0, 1, 1], [], []>} : vector<2x16xf32>, vector<16x32xf32>, vector<2x32xf32> -> vector<2x32xf32>
    %c0_54 = arith.constant 0 : index
    %c0_55 = arith.constant 0 : index
    %325 = vector.load %arg8[%c0_54, %c0_55] : memref<1x32xf32, #tpu.memory_space<vmem>>, vector<1x32xf32>
    %326 = vector.broadcast %325 : vector<1x32xf32> to vector<2x32xf32>
    %327 = arith.addf %324, %326 : vector<2x32xf32>
    %328 = arith.addf %321, %327 : vector<2x32xf32>
    %c0_56 = arith.constant 0 : index
    %c0_57 = arith.constant 0 : index
    %329 = vector.load %arg9[%c0_56, %c0_57] : memref<32x4xf32, #tpu.memory_space<vmem>>, vector<32x4xf32>
    %cst_58 = arith.constant dense<0.000000e+00> : vector<2x4xf32>
    %330 = tpu.matmul %328, %329, %cst_58 {dimension_numbers = #tpu.dot_dimension_numbers<[1], [0], [0], [1], [0, 0, 1, 1], [], []>} : vector<2x32xf32>, vector<32x4xf32>, vector<2x4xf32> -> vector<2x4xf32>
    %c0_59 = arith.constant 0 : index
    %c0_60 = arith.constant 0 : index
    %331 = vector.load %arg10[%c0_59, %c0_60] : memref<1x4xf32, #tpu.memory_space<vmem>>, vector<1x4xf32>
    %332 = vector.broadcast %331 : vector<1x4xf32> to vector<2x4xf32>
    %333 = arith.addf %330, %332 : vector<2x4xf32>
    %c0_61 = arith.constant 0 : index
    %c0_62 = arith.constant 0 : index
    %334 = vector.load %arg11[%c0_61, %c0_62] : memref<2x4xf32, #tpu.memory_space<vmem>>, vector<2x4xf32>
    tpu.vector_store %arg11[%c0_61, %c0_62], %333 {strides = array<i32>} : memref<2x4xf32, #tpu.memory_space<vmem>>, vector<2x4xf32>,
    return
  }
}

</mosaic_0001>

<bundles_post_ra>
// kernel: tpu_custom_call.1
= control target key start
LH: loop header
LB: loop body
LE: loop exit
PB: predicated region body
PF: predicated region fallthrough
CT: control target
= control target key end

     0   :  { %16 = vsyncpa [#allocation3], 0  ;;  %s2051_s0 = inlined_call_operand.hbm [shape: f32[16,16], index: 0, kind: input, shape index: {}]   ;;  %s2052_s1 = inlined_call_operand.hbm [shape: f32[16,128], index: 1, kind: input, shape index: {}]   ;;  %s2053_s2 = inlined_call_operand.vmem [shape: f32[32,128], index: 2, kind: input, shape index: {}]   ;;  %s2054_s3 = inlined_call_operand.vmem [shape: f32[1,128], index: 3, kind: input, shape index: {}]   ;;  %s2055_s4 = inlined_call_operand.hbm [shape: f32[32,128], index: 4, kind: input, shape index: {}]   ;;  %s2056_s5 = inlined_call_operand.hbm [shape: f32[32,128], index: 5, kind: input, shape index: {}]   ;;  %s2057_s6 = inlined_call_operand.vmem [shape: f32[1,128], index: 6, kind: input, shape index: {}]   ;;  %s2058_s7 = inlined_call_operand.hbm [shape: f32[16,32], index: 7, kind: input, shape index: {}]   ;;  %s2059_s8 = inlined_call_operand.vmem [shape: f32[1,32], index: 8, kind: input, shape index: {}]   ;;  %s2060_s9 = inlined_call_operand.vmem [shape: f32[32,4], index: 9, kind: input, shape index: {}]   ;;  %s2061_s10 = inlined_call_operand.vmem [shape: f32[1,4], index: 10, kind: input, shape index: {}]   ;;  %s2062_s11 = inlined_call_operand.hbm [shape: f32[2,4], index: 11, kind: output, shape index: {}]  }
   0x1   :  { %17 = vsyncpa [#allocation6], 0 }
   0x2   :  { %18 = vsyncpa [#allocation9], 0 }
   0x3   :  { %19 = vsyncpa [#allocation4], 0  ;;  %s37_s19 = sshll.u32 %s2052_s1, 4  ;;  %s1725_s20 = smov [#allocation5]   ;;  %s38_s19 = int_to_ptr.hbm [resolvable:$true] %s37_s19 }
   0x4   :  { %s39_s21 = sshll.u32 %s1725_s20, 4  ;;  %s67_s24 = sshll.u32 %s2056_s5, 4  ;;  %s40_s21 = int_to_ptr.vmem [resolvable:$true] %s39_s21  ;;  %s68_s24 = int_to_ptr.hbm [resolvable:$true] %s67_s24 }
   0x5   :  { %s1726_s25 = smov 128   ;;  %s1727_s26 = smov 8  }
   0x6   :  { %45 = dma.hbm_to_vmem [thread:$0]  %s38_s19, 256, %s40_s21, [#allocation6], %s1726_s25, %s1726_s25, %s1727_s26  }
   0x7   :  { %s1728_s27 = smov [#allocation8]   ;;  %s24_s12 = sshll.u32 %s2051_s0, 4  ;;  %s25_s12 = int_to_ptr.hbm [resolvable:$true] %s24_s12 }
   0x8   :  { %s69_s28 = sshll.u32 %s1728_s27, 4  ;;  %s54_s14 = sshll.u32 %s2055_s4, 4  ;;  %s70_s28 = int_to_ptr.vmem [resolvable:$true] %s69_s28  ;;  %s55_s14 = int_to_ptr.hbm [resolvable:$true] %s54_s14 }
   0x9   :  { %75 = dma.hbm_to_vmem [thread:$0]  %s68_s24, 512, %s70_s28, [#allocation9], %s1726_s25, %s1726_s25, %s1727_s26  }
   0xa   :  { %s1729_s15 = smov [#allocation2]   ;;  %s1730_s5 = smov [#allocation7]  }
   0xb   :  { %s26_s16 = sshll.u32 %s1729_s15, 4  ;;  %s56_s17 = sshll.u32 %s1730_s5, 4  ;;  %s27_s16 = int_to_ptr.vmem [resolvable:$true] %s26_s16  ;;  %s57_s17 = int_to_ptr.vmem [resolvable:$true] %s56_s17 }
   0xc   :  { %32 = dma.hbm_to_vmem [thread:$0]  %s25_s12, 256, %s27_s16, [#allocation3], %s1726_s25, %s1726_s25, %s1727_s26  }
   0xd   :  { %s82_s20 = sshll.u32 %s2058_s7, 4  ;;  %s1731_s0 = smov [#allocation10]   ;;  %s83_s20 = int_to_ptr.hbm [resolvable:$true] %s82_s20 }
   0xe   :  { %62 = dma.hbm_to_vmem [thread:$0]  %s55_s14, 512, %s57_s17, [#allocation6], %s1726_s25, %s1726_s25, %s1727_s26  }
   0xf   :  { %s84_s21 = sshll.u32 %s1731_s0, 4  ;;  %s85_s21 = int_to_ptr.vmem [resolvable:$true] %s84_s21 }
  0x10   :  { %90 = dma.hbm_to_vmem [thread:$0]  %s83_s20, 256, %s85_s21, [#allocation9], %s1726_s25, %s1726_s25, %s1727_s26  }
  0x11   :  { %1717 = dma.done.wait [#allocation3], 256  }
  0x12   :  { %1718 = vsyncadd [#allocation3], 4294967040 }
  0x13   :  { %1719 = dma.done.wait [#allocation6], 768  }
  0x14   :  { %1720 = vsyncadd [#allocation6], 4294966528 }
  0x15   :  { %1721 = dma.done.wait [#allocation9], 768  }
  0x16   :  { %1722 = vsyncadd [#allocation9], 4294966528  ;;  %v124_v0 = vld [vmem:[%s2053_s2 + $0x18] sm:$0xff]  ;;  %v123_v2 = vld [vmem:[%s2053_s2 + $0x10] sm:$0xff]  ;;  %vm129_vm0 = vcmask 130048   ;;  %v1732_v7 = vmov 0.0  }
  0x17   :  { %v120_v1 = vld [vmem:[#allocation5 + $0x8] sm:$0xff]  ;;  %175 = vmatpush.msra.mxu1 %v124_v0  ;;  %v119_v3 = vld [vmem:[#allocation5] sm:$0xff]  ;;  %v117_v4 = vld [vmem:[#allocation2] sm:$0xff]  ;;  %238 = vmatpush.msra.mxu2 %v124_v0  ;;  %s1733_s29 = smov 32   ;;  %vm159_vm5 = vcmask 261120   ;;  %vm706_vm14 = vcmask 1041408  }
  0x18   :  { %150 = vmatpush.msra.mxu0 %v120_v1  ;;  %v122_v5 = vld [vmem:[%s2053_s2 + $0x8] sm:$0xff]  ;;  %308 = vmatpush.msra.mxu3 %v124_v0  ;;  %v121_v6 = vld [vmem:[%s2053_s2] sm:$0xff]  ;;  %vm708_vm15 = vcmask 1043456   ;;  %s1735_s0 = smov [#allocation11]   ;;  %s1382_s22 = sshll.u32 %s2062_s11, 4  ;;  %s1383_s22 = int_to_ptr.hbm [resolvable:$true] %s1382_s22 }
  0x19   :  { %176 = vmatpush.msra.mxu1 %v123_v2  ;;  %239 = vmatpush.msra.mxu2 %v123_v2  ;;  %v1828_v8 = vld [vmem:[%s2054_s3] ss:$0 sm:$0xff]  ;;  %s1734_s3 = smov 64   ;;  %s1380_s21 = sshll.u32 %s1735_s0, 4  ;;  %s1381_s21 = int_to_ptr.vmem [resolvable:$true] %s1380_s21 }
  0x1a   :  { %151 = vmatpush.msra.mxu0 %v119_v3  ;;  %309 = vmatpush.msra.mxu3 %v123_v2 }
  0x1b   :  { %1394 = vmatmul.msk.f32.vlgmr.msra.gmra.mxu0 %vm129_vm0, %v117_v4  ;;  %177 = vmatpush.msra.mxu1 %v122_v5 }
  0x1c   :  { %240 = vmatpush.msra.mxu2 %v122_v5  ;;  %584 = vmatpush.msrb.mxu0 %v124_v0 }
  0x1d   :  { %178 = vmatpush.msra.mxu1 %v121_v6  ;;  %310 = vmatpush.msra.mxu3 %v122_v5 }
  0x1e   :  { %179 = vmatmul.f32.vlgmr.msra.gmra.mxu1 %v1732_v7  ;;  %241 = vmatpush.msra.mxu2 %v121_v6 }
  0x1f   :  { %311 = vmatpush.msra.mxu3 %v121_v6  ;;  %378 = vmatpush.msrb.mxu1 %v124_v0 }
  0x20   :  { %448 = vmatpush.msrb.mxu2 %v124_v0  ;;  %585 = vmatpush.msrb.mxu0 %v123_v2 }
  0x21   :  { %514 = vmatpush.msrb.mxu3 %v124_v0  ;;  %379 = vmatpush.msrb.mxu1 %v123_v2 }
  0x22   :  { %449 = vmatpush.msrb.mxu2 %v123_v2  ;;  %586 = vmatpush.msrb.mxu0 %v122_v5 }
  0x23   :  { %515 = vmatpush.msrb.mxu3 %v123_v2  ;;  %380 = vmatpush.msrb.mxu1 %v122_v5 }
  0x24   :  { %450 = vmatpush.msrb.mxu2 %v122_v5  ;;  %587 = vmatpush.msrb.mxu0 %v121_v6 }
  0x25   :  { %516 = vmatpush.msrb.mxu3 %v122_v5  ;;  %381 = vmatpush.msrb.mxu1 %v121_v6 }
  0x26   :  { %451 = vmatpush.msrb.mxu2 %v121_v6 }
  0x27   :  { %517 = vmatpush.msrb.mxu3 %v121_v6  ;;  %654 = vmatpush.msra.mxu1 %v124_v0 }
  0x29   :  { %655 = vmatpush.msra.mxu1 %v123_v2 }
  0x2b   :  { %656 = vmatpush.msra.mxu1 %v122_v5 }
  0x2d   :  { %657 = vmatpush.msra.mxu1 %v121_v6 }
  0x98   :  { %v153_v9 = vpop.f32.mrf.mxu0 }
  0x99   :  { %v1831_v10 = vadd.f32 %v1828_v8, %v153_v9 }
  0x9b   :  { %v180_v11 = vpop.f32.mrf.mxu1 }
  0x9c   :  { %v183_v12 = vadd.f32 %v180_v11, %v1831_v10 }
  0x9e   :  { %1445 = vtanh.f32 %v183_v12  ;;  %v1396_v14 = vmul.f32 -1.442695, %v183_v12 }
  0xa0   :  { %1447 = vpow2.f32 %v1396_v14 }
  0xa4   :  { %v1446_v13 = vpop.eup %1445 }
  0xa5   :  { %206 = vrot.lane.b32.xlu0 %v1446_v13, %s1733_s29 }
  0xa6   :  { %v1448_v15 = vpop.eup %1447 }
  0xa7   :  { %v187_v16 = vadd.f32 1.0, %v1448_v15 }
  0xa9   :  { %1449 = vrcp.f32 %v187_v16  ;;  %v199_v22 = vand.u32 2147483648, %v187_v16  ;;  %vm193_vm2 = vweird.f32 %v187_v16  ;;  %v197_v23 = vand.u32 2147483647, %v187_v16 }
  0xab   :  { %v200_v25 = vor.u32 1.1754944e-38, %v199_v22  ;;  %vm198_vm4 = vcmp.eq.f32.partialorder %v197_v23, 8.507059e+37 }
  0xaf   :  { %v1450_v17 = vpop.eup %1449 }
  0xb0   :  { %v189_v18 = vmul.f32 %v1450_v17, %v187_v16  ;;  %vm194_vm1 = vweird.f32 %v1450_v17 }
  0xb1   :  { %vm195_vm3 = vmor %vm193_vm2, %vm194_vm1 }
  0xb2   :  { %v190_v19 = vsub.f32 1.0, %v189_v18 }
  0xb4   :  { %v191_v20 = vmul.f32 %v1450_v17, %v190_v19 }
  0xb6   :  { %v192_v21 = vadd.f32 %v1450_v17, %v191_v20 }
  0xb8   :  { %v196_v24 = vsel %vm195_vm3, %v1450_v17, %v192_v21 }
  0xb9   :  { %v201_v27 = vsel %vm198_vm4, %v200_v25, %v196_v24 }
  0xba   :  { %v204_v29 = vmul.f32 0.0, %v201_v27 }
 0x117   :  { %v207_v26 = vpop.permute.xlu0 %206 }
 0x118   :  { %v209_v28 = vmul.f32 %v207_v26, %v201_v27 }
 0x11a   :  { %211 = vrot.lane.b32.xlu0 %v209_v28, %s1733_s29 }
 0x18c   :  { %v212_v30 = vpop.permute.xlu0 %211 }
 0x18d   :  { %v214_v31 = vadd.f32 %v212_v30, %v204_v29 }
 0x18f   :  { %1451 = vtanh.f32 %v214_v31  ;;  %v271_v55 = vrot.slane %v214_v31, 6 }
 0x195   :  { %v1452_v32 = vpop.eup %1451 }
 0x196   :  { %217 = vrot.lane.b32.xlu1 %v1452_v32, %s1733_s29 }
 0x208   :  { %v218_v33 = vpop.permute.xlu1 %217 }
 0x209   :  { %v1837_v34 = vmul.f32 %v218_v33, %v201_v27 }
 0x20b   :  { %222 = vrot.lane.b32.xlu1 %v1837_v34, %s1734_s3 }
 0x27d   :  { %v223_v35 = vpop.permute.xlu1 %222 }
 0x27e   :  { %1397 = vmatmul.msk.f32.vlgmr.msra.gmra.mxu2 %vm159_vm5, %v223_v35 }
 0x301   :  { %v243_v36 = vpop.f32.mrf.mxu2 }
 0x302   :  { %v247_v37 = vrot.slane %v243_v36, 6 }
 0x304   :  { %v249_v38 = vadd.f32 %v247_v37, %v1831_v10 }
 0x306   :  { %1453 = vtanh.f32 %v249_v38  ;;  %v1398_v40 = vmul.f32 -1.442695, %v249_v38 }
 0x308   :  { %1455 = vpow2.f32 %v1398_v40 }
 0x30c   :  { %v1454_v39 = vpop.eup %1453 }
 0x30d   :  { %275 = vrot.lane.b32.xlu2 %v1454_v39, %s1733_s29 }
 0x30e   :  { %v1456_v41 = vpop.eup %1455 }
 0x30f   :  { %v253_v42 = vadd.f32 1.0, %v1456_v41 }
 0x311   :  { %1457 = vrcp.f32 %v253_v42  ;;  %v265_v48 = vand.u32 2147483648, %v253_v42  ;;  %vm259_vm7 = vweird.f32 %v253_v42  ;;  %v263_v49 = vand.u32 2147483647, %v253_v42 }
 0x313   :  { %v266_v51 = vor.u32 1.1754944e-38, %v265_v48  ;;  %vm264_vm9 = vcmp.eq.f32.partialorder %v263_v49, 8.507059e+37 }
 0x317   :  { %v1458_v43 = vpop.eup %1457 }
 0x318   :  { %v255_v44 = vmul.f32 %v1458_v43, %v253_v42  ;;  %vm260_vm6 = vweird.f32 %v1458_v43 }
 0x319   :  { %vm261_vm8 = vmor %vm259_vm7, %vm260_vm6  ;;  %vm710_vm6 = vcmask 1045504  }
 0x31a   :  { %v256_v45 = vsub.f32 1.0, %v255_v44 }
 0x31c   :  { %v257_v46 = vmul.f32 %v1458_v43, %v256_v45 }
 0x31e   :  { %v258_v47 = vadd.f32 %v1458_v43, %v257_v46 }
 0x320   :  { %v262_v50 = vsel %vm261_vm8, %v1458_v43, %v258_v47 }
 0x321   :  { %v267_v53 = vsel %vm264_vm9, %v266_v51, %v262_v50 }
 0x322   :  { %v273_v56 = vmul.f32 %v271_v55, %v267_v53 }
 0x367   :  { %v276_v52 = vpop.permute.xlu2 %275 }
 0x368   :  { %v278_v54 = vmul.f32 %v276_v52, %v267_v53 }
 0x36a   :  { %280 = vrot.lane.b32.xlu2 %v278_v54, %s1733_s29 }
 0x3c4   :  { %v281_v57 = vpop.permute.xlu2 %280 }
 0x3c5   :  { %v283_v58 = vadd.f32 %v281_v57, %v273_v56 }
 0x3c7   :  { %1459 = vtanh.f32 %v283_v58  ;;  %v341_v22 = vrot.slane %v283_v58, 6 }
 0x3cd   :  { %v1460_v59 = vpop.eup %1459 }
 0x3ce   :  { %286 = vrot.lane.b32.xlu0 %v1460_v59, %s1733_s29 }
 0x440   :  { %v287_v60 = vpop.permute.xlu0 %286 }
 0x441   :  { %v289_v61 = vmul.f32 %v287_v60, %v267_v53  ;;  %v118_v60 = vld [vmem:[#allocation2 + $0x8] sm:$0xff] }
 0x442   :  { %1395 = vmatmul.msk.f32.gmra.mxu0 %vm129_vm0, %v118_v60 }
 0x443   :  { %v291_v62 = vrot.slane %v289_v61, 2  ;;  %v707_v29 = vsel %vm706_vm14, %v1837_v34, %v289_v61 }
 0x445   :  { %292 = vrot.lane.b32.xlu1 %v291_v62, %s1734_s3 }
 0x4b7   :  { %v293_v63 = vpop.permute.xlu1 %292 }
 0x4b8   :  { %1399 = vmatmul.msk.f32.vlgmr.msra.gmra.mxu3 %vm159_vm5, %v293_v63 }
 0x4bf   :  { %v156_v62 = vpop.f32.mrf.mxu0 }
 0x4c0   :  { %v1866_v63 = vadd.f32 %v1828_v8, %v156_v62 }
 0x53b   :  { %v313_v0 = vpop.f32.mrf.mxu3 }
 0x53c   :  { %v317_v1 = vrot.slane %v313_v0, 4 }
 0x53e   :  { %v319_v2 = vadd.f32 %v317_v1, %v1831_v10 }
 0x540   :  { %1461 = vtanh.f32 %v319_v2  ;;  %v1400_v4 = vmul.f32 -1.442695, %v319_v2 }
 0x542   :  { %1463 = vpow2.f32 %v1400_v4 }
 0x546   :  { %v1462_v3 = vpop.eup %1461 }
 0x547   :  { %345 = vrot.lane.b32.xlu2 %v1462_v3, %s1733_s29 }
 0x548   :  { %v1464_v5 = vpop.eup %1463 }
 0x549   :  { %v323_v6 = vadd.f32 1.0, %v1464_v5 }
 0x54b   :  { %1465 = vrcp.f32 %v323_v6  ;;  %v335_v15 = vand.u32 2147483648, %v323_v6  ;;  %vm329_vm11 = vweird.f32 %v323_v6  ;;  %v333_v16 = vand.u32 2147483647, %v323_v6 }
 0x54d   :  { %v336_v18 = vor.u32 1.1754944e-38, %v335_v15  ;;  %vm334_vm13 = vcmp.eq.f32.partialorder %v333_v16, 8.507059e+37 }
 0x551   :  { %v1466_v9 = vpop.eup %1465 }
 0x552   :  { %v325_v11 = vmul.f32 %v1466_v9, %v323_v6  ;;  %vm330_vm10 = vweird.f32 %v1466_v9 }
 0x553   :  { %vm331_vm12 = vmor %vm329_vm11, %vm330_vm10 }
 0x554   :  { %v326_v12 = vsub.f32 1.0, %v325_v11 }
 0x556   :  { %v327_v13 = vmul.f32 %v1466_v9, %v326_v12 }
 0x558   :  { %v328_v14 = vadd.f32 %v1466_v9, %v327_v13 }
 0x55a   :  { %v332_v17 = vsel %vm331_vm12, %v1466_v9, %v328_v14 }
 0x55b   :  { %v337_v20 = vsel %vm334_vm13, %v336_v18, %v332_v17 }
 0x55c   :  { %v343_v23 = vmul.f32 %v341_v22, %v337_v20  ;;  %v716_v22 = vld [vmem:[#allocation7 + $0x8] sm:$0xff] }
 0x5a1   :  { %v346_v19 = vpop.permute.xlu2 %345 }
 0x5a2   :  { %v348_v21 = vmul.f32 %v346_v19, %v337_v20 }
 0x5a4   :  { %350 = vrot.lane.b32.xlu0 %v348_v21, %s1733_s29  ;;  %v717_v21 = vld [vmem:[#allocation7 + $0x10] sm:$0xff] }
 0x616   :  { %v351_v24 = vpop.permute.xlu0 %350 }
 0x617   :  { %v353_v25 = vadd.f32 %v351_v24, %v343_v23  ;;  %v715_v23 = vld [vmem:[#allocation7] sm:$0xff] }
 0x619   :  { %1467 = vtanh.f32 %v353_v25  ;;  %v411_v51 = vrot.slane %v353_v25, 6 }
 0x61f   :  { %v1468_v26 = vpop.eup %1467 }
 0x620   :  { %356 = vrot.lane.b32.xlu1 %v1468_v26, %s1733_s29 }
 0x692   :  { %v357_v27 = vpop.permute.xlu1 %356 }
 0x693   :  { %v359_v28 = vmul.f32 %v357_v27, %v337_v20  ;;  %v718_v20 = vld [vmem:[#allocation7 + $0x18] sm:$0xff] }
 0x694   :  { %749 = vmatpush.msra.mxu2 %v718_v20 }
 0x695   :  { %v361_v30 = vrot.slane %v359_v28, 4  ;;  %v709_v31 = vsel %vm708_vm15, %v707_v29, %v359_v28 }
 0x696   :  { %750 = vmatpush.msra.mxu2 %v717_v21 }
 0x697   :  { %362 = vrot.lane.b32.xlu2 %v361_v30, %s1734_s3 }
 0x698   :  { %751 = vmatpush.msra.mxu2 %v716_v22 }
 0x69a   :  { %752 = vmatpush.msra.mxu2 %v715_v23 }
 0x6f1   :  { %v363_v32 = vpop.permute.xlu2 %362 }
 0x6f2   :  { %1401 = vmatmul.msk.f32.vlgmr.msrb.gmra.mxu1 %vm159_vm5, %v363_v32  ;;  %v1881_v32 = vld [vmem:[#allocation8 + $0x18] sm:$0xff] }
 0x6f3   :  { %772 = vmatpush.msra.mxu3 %v1881_v32  ;;  %835 = vmatpush.msra.mxu0 %v1881_v32 }
 0x6f4   :  { %905 = vmatpush.msrb.mxu1 %v1881_v32 }
 0x76f   :  { %v383_v33 = vpop.f32.mrf.mxu1 }
 0x770   :  { %v387_v35 = vrot.slane %v383_v33, 2  ;;  %v1883_v33 = vld [vmem:[#allocation8 + $0x10] sm:$0xff] }
 0x771   :  { %773 = vmatpush.msra.mxu3 %v1883_v33  ;;  %836 = vmatpush.msra.mxu0 %v1883_v33 }
 0x772   :  { %v389_v36 = vadd.f32 %v387_v35, %v1831_v10  ;;  %v1887_v35 = vld [vmem:[#allocation8 + $0x8] sm:$0xff]  ;;  %906 = vmatpush.msrb.mxu1 %v1883_v33 }
 0x773   :  { %774 = vmatpush.msra.mxu3 %v1887_v35  ;;  %837 = vmatpush.msra.mxu0 %v1887_v35 }
 0x774   :  { %1469 = vtanh.f32 %v389_v36  ;;  %v1402_v38 = vmul.f32 -1.442695, %v389_v36  ;;  %v1893_v36 = vld [vmem:[#allocation8] sm:$0xff]  ;;  %907 = vmatpush.msrb.mxu1 %v1887_v35 }
 0x775   :  { %775 = vmatpush.msra.mxu3 %v1893_v36  ;;  %838 = vmatpush.msra.mxu0 %v1893_v36 }
 0x776   :  { %1471 = vpow2.f32 %v1402_v38  ;;  %908 = vmatpush.msrb.mxu1 %v1893_v36 }
 0x77a   :  { %v1470_v37 = vpop.eup %1469 }
 0x77b   :  { %415 = vrot.lane.b32.xlu0 %v1470_v37, %s1733_s29 }
 0x77c   :  { %v1472_v39 = vpop.eup %1471 }
 0x77d   :  { %v393_v34 = vadd.f32 1.0, %v1472_v39 }
 0x77f   :  { %1473 = vrcp.f32 %v393_v34  ;;  %v405_v45 = vand.u32 2147483648, %v393_v34  ;;  %vm399_vm2 = vweird.f32 %v393_v34  ;;  %v403_v46 = vand.u32 2147483647, %v393_v34 }
 0x781   :  { %v406_v47 = vor.u32 1.1754944e-38, %v405_v45  ;;  %vm404_vm4 = vcmp.eq.f32.partialorder %v403_v46, 8.507059e+37 }
 0x785   :  { %v1474_v40 = vpop.eup %1473 }
 0x786   :  { %v395_v41 = vmul.f32 %v1474_v40, %v393_v34  ;;  %vm400_vm1 = vweird.f32 %v1474_v40  ;;  %v1918_v34 = vld [vmem:[%s2057_s6] ss:$0 sm:$0xff] }
 0x787   :  { %vm401_vm3 = vmor %vm399_vm2, %vm400_vm1 }
 0x788   :  { %v396_v42 = vsub.f32 1.0, %v395_v41 }
 0x78a   :  { %v397_v43 = vmul.f32 %v1474_v40, %v396_v42 }
 0x78c   :  { %v398_v44 = vadd.f32 %v1474_v40, %v397_v43 }
 0x78e   :  { %v402_v10 = vsel %vm401_vm3, %v1474_v40, %v398_v44 }
 0x78f   :  { %v407_v49 = vsel %vm404_vm4, %v406_v47, %v402_v10 }
 0x790   :  { %v413_v52 = vmul.f32 %v411_v51, %v407_v49 }
 0x7ed   :  { %v416_v48 = vpop.permute.xlu0 %415 }
 0x7ee   :  { %v418_v50 = vmul.f32 %v416_v48, %v407_v49 }
 0x7f0   :  { %420 = vrot.lane.b32.xlu1 %v418_v50, %s1733_s29 }
 0x862   :  { %v421_v53 = vpop.permute.xlu1 %420 }
 0x863   :  { %v423_v54 = vadd.f32 %v421_v53, %v413_v52 }
 0x865   :  { %1475 = vtanh.f32 %v423_v54  ;;  %v478_v24 = vrot.slane %v423_v54, 6 }
 0x86b   :  { %v1476_v55 = vpop.eup %1475 }
 0x86c   :  { %426 = vrot.lane.b32.xlu2 %v1476_v55, %s1733_s29 }
 0x8c6   :  { %v427_v56 = vpop.permute.xlu2 %426 }
 0x8c7   :  { %v429_v57 = vmul.f32 %v427_v56, %v407_v49 }
 0x8c9   :  { %v431_v58 = vrot.slane %v429_v57, 6  ;;  %v711_v59 = vsel %vm710_vm6, %v709_v31, %v429_v57 }
 0x8cb   :  { %432 = vrot.lane.b32.xlu0 %v431_v58, %s1734_s3 }
 0x93d   :  { %v433_v61 = vpop.permute.xlu0 %432 }
 0x93e   :  { %1403 = vmatmul.msk.f32.vlgmr.msrb.gmra.mxu2 %vm159_vm5, %v433_v61 }
 0x93f   :  { %1181 = vmatpush.msrb.mxu2 %v1881_v32 }
 0x941   :  { %1182 = vmatpush.msrb.mxu2 %v1883_v33 }
 0x943   :  { %1183 = vmatpush.msrb.mxu2 %v1887_v35 }
 0x945   :  { %1184 = vmatpush.msrb.mxu2 %v1893_v36 }
 0x9c1   :  { %v453_v0 = vpop.f32.mrf.mxu2 }
 0x9c2   :  { %v456_v1 = vadd.f32 %v453_v0, %v1866_v63 }
 0x9c4   :  { %1477 = vtanh.f32 %v456_v1  ;;  %v1404_v3 = vmul.f32 -1.442695, %v456_v1 }
 0x9c6   :  { %1479 = vpow2.f32 %v1404_v3 }
 0x9ca   :  { %v1478_v2 = vpop.eup %1477 }
 0x9cb   :  { %482 = vrot.lane.b32.xlu1 %v1478_v2, %s1733_s29 }
 0x9cc   :  { %v1480_v4 = vpop.eup %1479 }
 0x9cd   :  { %v460_v5 = vadd.f32 1.0, %v1480_v4 }
 0x9cf   :  { %1481 = vrcp.f32 %v460_v5  ;;  %v472_v8 = vand.u32 2147483648, %v460_v5  ;;  %vm466_vm8 = vweird.f32 %v460_v5  ;;  %v470_v14 = vand.u32 2147483647, %v460_v5 }
 0x9d1   :  { %v473_v16 = vor.u32 1.1754944e-38, %v472_v8  ;;  %vm471_vm10 = vcmp.eq.f32.partialorder %v470_v14, 8.507059e+37 }
 0x9d5   :  { %v1482_v6 = vpop.eup %1481 }
 0x9d6   :  { %v462_v9 = vmul.f32 %v1482_v6, %v460_v5  ;;  %vm467_vm7 = vweird.f32 %v1482_v6 }
 0x9d7   :  { %vm468_vm9 = vmor %vm466_vm8, %vm467_vm7 }
 0x9d8   :  { %v463_v11 = vsub.f32 1.0, %v462_v9 }
 0x9da   :  { %v464_v12 = vmul.f32 %v1482_v6, %v463_v11 }
 0x9dc   :  { %v465_v13 = vadd.f32 %v1482_v6, %v464_v12 }
 0x9de   :  { %v469_v15 = vsel %vm468_vm9, %v1482_v6, %v465_v13 }
 0x9df   :  { %v474_v18 = vsel %vm471_vm10, %v473_v16, %v469_v15 }
 0x9e0   :  { %v480_v25 = vmul.f32 %v478_v24, %v474_v18 }
 0xa3d   :  { %v483_v17 = vpop.permute.xlu1 %482 }
 0xa3e   :  { %v485_v19 = vmul.f32 %v483_v17, %v474_v18 }
 0xa40   :  { %487 = vrot.lane.b32.xlu2 %v485_v19, %s1733_s29 }
 0xa48   :  { %729 = vrot.lane.b32.xlu2 %v711_v59, %s1734_s3 }
 0xa9a   :  { %v488_v26 = vpop.permute.xlu2 %487 }
 0xa9b   :  { %v1872_v27 = vadd.f32 %v488_v26, %v480_v25 }
 0xa9d   :  { %1483 = vtanh.f32 %v1872_v27  ;;  %v547_v14 = vrot.slane %v1872_v27, 6 }
 0xaa2   :  { %v730_v28 = vpop.permute.xlu2 %729 }
 0xaa3   :  { %v1484_v29 = vpop.eup %1483  ;;  %1411 = vmatmul.msk.f32.vlgmr.msra.gmra.mxu2 %vm159_vm5, %v730_v28 }
 0xaa4   :  { %493 = vrot.lane.b32.xlu0 %v1484_v29, %s1733_s29 }
 0xb16   :  { %v494_v30 = vpop.permute.xlu0 %493 }
 0xb17   :  { %v1877_v31 = vmul.f32 %v494_v30, %v474_v18 }
 0xb19   :  { %498 = vrot.lane.b32.xlu1 %v1877_v31, %s1734_s3 }
 0xb26   :  { %v754_v41 = vpop.f32.mrf.mxu2 }
 0xb8b   :  { %v499_v37 = vpop.permute.xlu1 %498 }
 0xb8c   :  { %1405 = vmatmul.msk.f32.vlgmr.msrb.gmra.mxu3 %vm159_vm5, %v499_v37 }
 0xb8d   :  { %975 = vmatpush.msrb.mxu3 %v1881_v32 }
 0xb8f   :  { %976 = vmatpush.msrb.mxu3 %v1883_v33 }
 0xb91   :  { %977 = vmatpush.msrb.mxu3 %v1887_v35 }
 0xb93   :  { %978 = vmatpush.msrb.mxu3 %v1893_v36 }
 0xb94   :  { %776 = vmatmul.f32.vlgmr.msra.gmra.mxu3 %v1732_v7  ;;  %v1922_v7 = vadd.f32 %v1918_v34, %v754_v41 }
 0xb95   :  { %1251 = vmatpush.msra.mxu3 %v1881_v32 }
 0xb97   :  { %1252 = vmatpush.msra.mxu3 %v1883_v33 }
 0xb99   :  { %1253 = vmatpush.msra.mxu3 %v1887_v35 }
 0xb9b   :  { %1254 = vmatpush.msra.mxu3 %v1893_v36 }
 0xc0f   :  { %v519_v38 = vpop.f32.mrf.mxu3 }
 0xc10   :  { %v523_v39 = vrot.slane %v519_v38, 6 }
 0xc12   :  { %v525_v40 = vadd.f32 %v523_v39, %v1866_v63 }
 0xc14   :  { %1485 = vtanh.f32 %v525_v40  ;;  %v1406_v46 = vmul.f32 -1.442695, %v525_v40 }
 0xc17   :  { %v777_v42 = vpop.f32.mrf.mxu3 }
 0xc18   :  { %v780_v43 = vadd.f32 %v777_v42, %v1922_v7 }
 0xc1a   :  { %v1486_v44 = vpop.eup %1485  ;;  %1487 = vtanh.f32 %v780_v43  ;;  %v1413_v10 = vmul.f32 -1.442695, %v780_v43 }
 0xc1b   :  { %551 = vrot.lane.b32.xlu0 %v1486_v44, %s1733_s29  ;;  %1489 = vpow2.f32 %v1406_v46 }
 0xc1c   :  { %1491 = vpow2.f32 %v1413_v10 }
 0xc20   :  { %v1488_v45 = vpop.eup %1487 }
 0xc21   :  { %803 = vrot.lane.b32.xlu1 %v1488_v45, %s1733_s29  ;;  %v1490_v47 = vpop.eup %1489 }
 0xc22   :  { %v529_v48 = vadd.f32 1.0, %v1490_v47  ;;  %v1492_v49 = vpop.eup %1491 }
 0xc23   :  { %v784_v50 = vadd.f32 1.0, %v1492_v49 }
 0xc24   :  { %1493 = vrcp.f32 %v529_v48  ;;  %v541_v59 = vand.u32 2147483648, %v529_v48  ;;  %vm535_vm12 = vweird.f32 %v529_v48  ;;  %v539_v60 = vand.u32 2147483647, %v529_v48 }
 0xc25   :  { %1495 = vrcp.f32 %v784_v50  ;;  %v796_v4 = vand.u32 2147483648, %v784_v50  ;;  %vm790_vm3 = vweird.f32 %v784_v50  ;;  %v794_v6 = vand.u32 2147483647, %v784_v50 }
 0xc26   :  { %v542_v0 = vor.u32 1.1754944e-38, %v541_v59  ;;  %vm540_vm1 = vcmp.eq.f32.partialorder %v539_v60, 8.507059e+37 }
 0xc27   :  { %v797_v11 = vor.u32 1.1754944e-38, %v796_v4  ;;  %vm795_vm7 = vcmp.eq.f32.partialorder %v794_v6, 8.507059e+37 }
 0xc2a   :  { %v1494_v51 = vpop.eup %1493 }
 0xc2b   :  { %v531_v52 = vmul.f32 %v1494_v51, %v529_v48  ;;  %v1496_v53 = vpop.eup %1495  ;;  %vm536_vm11 = vweird.f32 %v1494_v51 }
 0xc2c   :  { %v786_v55 = vmul.f32 %v1496_v53, %v784_v50  ;;  %vm537_vm13 = vmor %vm535_vm12, %vm536_vm11  ;;  %vm791_vm2 = vweird.f32 %v1496_v53 }
 0xc2d   :  { %v532_v54 = vsub.f32 1.0, %v531_v52  ;;  %vm792_vm4 = vmor %vm790_vm3, %vm791_vm2 }
 0xc2e   :  { %v787_v57 = vsub.f32 1.0, %v786_v55 }
 0xc2f   :  { %v533_v56 = vmul.f32 %v1494_v51, %v532_v54 }
 0xc30   :  { %v788_v61 = vmul.f32 %v1496_v53, %v787_v57 }
 0xc31   :  { %v534_v58 = vadd.f32 %v1494_v51, %v533_v56 }
 0xc32   :  { %v789_v1 = vadd.f32 %v1496_v53, %v788_v61 }
 0xc33   :  { %v538_v62 = vsel %vm537_vm13, %v1494_v51, %v534_v58 }
 0xc34   :  { %v543_v3 = vsel %vm540_vm1, %v542_v0, %v538_v62  ;;  %v793_v9 = vsel %vm792_vm4, %v1496_v53, %v789_v1 }
 0xc35   :  { %v798_v13 = vsel %vm795_vm7, %v797_v11, %v793_v9  ;;  %v549_v15 = vmul.f32 %v547_v14, %v543_v3 }
 0xc36   :  { %v801_v19 = vmul.f32 0.0, %v798_v13 }
 0xc8d   :  { %v552_v2 = vpop.permute.xlu0 %551 }
 0xc8e   :  { %v554_v5 = vmul.f32 %v552_v2, %v543_v3 }
 0xc90   :  { %556 = vrot.lane.b32.xlu2 %v554_v5, %s1733_s29 }
 0xc93   :  { %v804_v12 = vpop.permute.xlu1 %803 }
 0xc94   :  { %v806_v8 = vmul.f32 %v804_v12, %v798_v13 }
 0xc96   :  { %808 = vrot.lane.b32.xlu0 %v806_v8, %s1733_s29 }
 0xcea   :  { %v557_v16 = vpop.permute.xlu2 %556 }
 0xceb   :  { %v1930_v17 = vadd.f32 %v557_v16, %v549_v15 }
 0xced   :  { %1497 = vtanh.f32 %v1930_v17 }
 0xcf3   :  { %v1498_v18 = vpop.eup %1497 }
 0xcf4   :  { %562 = vrot.lane.b32.xlu1 %v1498_v18, %s1733_s29 }
 0xd08   :  { %v809_v20 = vpop.permute.xlu0 %808 }
 0xd09   :  { %v1934_v21 = vadd.f32 %v809_v20, %v801_v19 }
 0xd0b   :  { %1499 = vtanh.f32 %v1934_v21  ;;  %v868_v16 = vrot.slane %v1934_v21, 6 }
 0xd11   :  { %v1500_v22 = vpop.eup %1499 }
 0xd12   :  { %814 = vrot.lane.b32.xlu2 %v1500_v22, %s1733_s29 }
 0xd66   :  { %v563_v23 = vpop.permute.xlu1 %562 }
 0xd67   :  { %v1938_v24 = vmul.f32 %v563_v23, %v543_v3 }
 0xd69   :  { %v567_v25 = vrot.slane %v1938_v24, 2 }
 0xd6b   :  { %568 = vrot.lane.b32.xlu0 %v567_v25, %s1734_s3 }
 0xd6c   :  { %v815_v26 = vpop.permute.xlu2 %814 }
 0xd6d   :  { %v817_v27 = vmul.f32 %v815_v26, %v798_v13  ;;  %v617_v13 = vrot.slane %v1930_v17, 6  ;;  %v712_v26 = vsel %vm706_vm14, %v1877_v31, %v1938_v24 }
 0xd6f   :  { %819 = vrot.lane.b32.xlu1 %v817_v27, %s1734_s3 }
 0xddd   :  { %v569_v28 = vpop.permute.xlu0 %568 }
 0xdde   :  { %1407 = vmatmul.msk.f32.vlgmr.msrb.gmra.mxu0 %vm159_vm5, %v569_v28 }
 0xddf   :  { %1045 = vmatpush.msrb.mxu0 %v1881_v32 }
 0xde1   :  { %1046 = vmatpush.msrb.mxu0 %v1883_v33  ;;  %v820_v29 = vpop.permute.xlu1 %819 }
 0xde3   :  { %1047 = vmatpush.msrb.mxu0 %v1887_v35 }
 0xde5   :  { %1048 = vmatpush.msrb.mxu0 %v1893_v36 }
 0xde6   :  { %1414 = vmatmul.msk.f32.vlgmr.msra.gmra.mxu0 %vm159_vm5, %v820_v29 }
 0xe5b   :  { %v589_v30 = vpop.f32.mrf.mxu0 }
 0xe5c   :  { %v593_v37 = vrot.slane %v589_v30, 4 }
 0xe5e   :  { %v595_v38 = vadd.f32 %v593_v37, %v1866_v63 }
 0xe60   :  { %1501 = vtanh.f32 %v595_v38  ;;  %v1408_v44 = vmul.f32 -1.442695, %v595_v38 }
 0xe63   :  { %v840_v39 = vpop.f32.mrf.mxu0 }
 0xe64   :  { %v844_v40 = vrot.slane %v840_v39, 6 }
 0xe66   :  { %v1502_v41 = vpop.eup %1501  ;;  %v846_v42 = vadd.f32 %v844_v40, %v1922_v7 }
 0xe67   :  { %621 = vrot.lane.b32.xlu2 %v1502_v41, %s1733_s29 }
 0xe68   :  { %1503 = vtanh.f32 %v846_v42  ;;  %v1415_v49 = vmul.f32 -1.442695, %v846_v42 }
 0xe69   :  { %1505 = vpow2.f32 %v1408_v44 }
 0xe6e   :  { %v1504_v43 = vpop.eup %1503 }
 0xe6f   :  { %872 = vrot.lane.b32.xlu0 %v1504_v43, %s1733_s29  ;;  %v1506_v45 = vpop.eup %1505 }
 0xe70   :  { %v599_v46 = vadd.f32 1.0, %v1506_v45 }
 0xe72   :  { %1507 = vrcp.f32 %v599_v46  ;;  %v611_v52 = vand.u32 2147483648, %v599_v46  ;;  %vm605_vm9 = vweird.f32 %v599_v46  ;;  %v609_v53 = vand.u32 2147483647, %v599_v46 }
 0xe73   :  { %1509 = vpow2.f32 %v1415_v49 }
 0xe74   :  { %v612_v56 = vor.u32 1.1754944e-38, %v611_v52  ;;  %vm610_vm11 = vcmp.eq.f32.partialorder %v609_v53, 8.507059e+37 }
 0xe78   :  { %v1508_v10 = vpop.eup %1507 }
 0xe79   :  { %v601_v47 = vmul.f32 %v1508_v10, %v599_v46  ;;  %vm606_vm8 = vweird.f32 %v1508_v10  ;;  %v1510_v54 = vpop.eup %1509 }
 0xe7a   :  { %vm607_vm10 = vmor %vm605_vm9, %vm606_vm8  ;;  %v850_v57 = vadd.f32 1.0, %v1510_v54 }
 0xe7b   :  { %v602_v48 = vsub.f32 1.0, %v601_v47 }
 0xe7c   :  { %1511 = vrcp.f32 %v850_v57  ;;  %v862_v3 = vand.u32 2147483648, %v850_v57  ;;  %vm856_vm13 = vweird.f32 %v850_v57  ;;  %v860_v4 = vand.u32 2147483647, %v850_v57 }
 0xe7d   :  { %v603_v50 = vmul.f32 %v1508_v10, %v602_v48 }
 0xe7e   :  { %v863_v6 = vor.u32 1.1754944e-38, %v862_v3  ;;  %vm861_vm2 = vcmp.eq.f32.partialorder %v860_v4, 8.507059e+37 }
 0xe7f   :  { %v604_v51 = vadd.f32 %v1508_v10, %v603_v50 }
 0xe81   :  { %v608_v55 = vsel %vm607_vm10, %v1508_v10, %v604_v51 }
 0xe82   :  { %v613_v59 = vsel %vm610_vm11, %v612_v56, %v608_v55  ;;  %v1512_v61 = vpop.eup %1511 }
 0xe83   :  { %v852_v62 = vmul.f32 %v1512_v61, %v850_v57  ;;  %vm857_vm12 = vweird.f32 %v1512_v61  ;;  %v619_v8 = vmul.f32 %v617_v13, %v613_v59 }
 0xe84   :  { %vm858_vm1 = vmor %vm856_vm13, %vm857_vm12 }
 0xe85   :  { %v853_v0 = vsub.f32 1.0, %v852_v62 }
 0xe87   :  { %v854_v1 = vmul.f32 %v1512_v61, %v853_v0 }
 0xe89   :  { %v855_v2 = vadd.f32 %v1512_v61, %v854_v1 }
 0xe8b   :  { %v859_v5 = vsel %vm858_vm1, %v1512_v61, %v855_v2 }
 0xe8c   :  { %v864_v11 = vsel %vm861_vm2, %v863_v6, %v859_v5 }
 0xe8d   :  { %v870_v18 = vmul.f32 %v868_v16, %v864_v11 }
 0xec1   :  { %v622_v58 = vpop.permute.xlu2 %621 }
 0xec2   :  { %v624_v60 = vmul.f32 %v622_v58, %v613_v59 }
 0xec4   :  { %626 = vrot.lane.b32.xlu1 %v624_v60, %s1733_s29 }
 0xee1   :  { %v873_v9 = vpop.permute.xlu0 %872 }
 0xee2   :  { %v875_v12 = vmul.f32 %v873_v9, %v864_v11 }
 0xee4   :  { %877 = vrot.lane.b32.xlu2 %v875_v12, %s1733_s29 }
 0xf36   :  { %v627_v14 = vpop.permute.xlu1 %626 }
 0xf37   :  { %v1956_v15 = vadd.f32 %v627_v14, %v619_v8 }
 0xf39   :  { %1513 = vtanh.f32 %v1956_v15 }
 0xf3e   :  { %v878_v19 = vpop.permute.xlu2 %877 }
 0xf3f   :  { %v1514_v20 = vpop.eup %1513  ;;  %v880_v22 = vadd.f32 %v878_v19, %v870_v18 }
 0xf40   :  { %632 = vrot.lane.b32.xlu0 %v1514_v20, %s1733_s29 }
 0xf41   :  { %1515 = vtanh.f32 %v880_v22  ;;  %v938_v55 = vrot.slane %v880_v22, 6 }
 0xf47   :  { %v1516_v23 = vpop.eup %1515 }
 0xf48   :  { %883 = vrot.lane.b32.xlu1 %v1516_v23, %s1733_s29  ;;  %v687_v23 = vrot.slane %v1956_v15, 6 }
 0xfb2   :  { %v633_v25 = vpop.permute.xlu0 %632 }
 0xfb3   :  { %v635_v17 = vmul.f32 %v633_v25, %v613_v59 }
 0xfb5   :  { %v637_v27 = vrot.slane %v635_v17, 4  ;;  %v1966_v28 = vsel %vm708_vm15, %v712_v26, %v635_v17 }
 0xfb7   :  { %638 = vrot.lane.b32.xlu2 %v637_v27, %s1734_s3 }
 0xfba   :  { %v884_v21 = vpop.permute.xlu1 %883 }
 0xfbb   :  { %v886_v29 = vmul.f32 %v884_v21, %v864_v11 }
 0xfbd   :  { %v888_v30 = vrot.slane %v886_v29, 2 }
 0xfbf   :  { %889 = vrot.lane.b32.xlu0 %v888_v30, %s1734_s3 }
0x1011   :  { %v639_v37 = vpop.permute.xlu2 %638 }
0x1012   :  { %1409 = vmatmul.msk.f32.vlgmr.msra.gmra.mxu1 %vm159_vm5, %v639_v37 }
0x1013   :  { %1111 = vmatpush.msra.mxu1 %v1881_v32 }
0x1015   :  { %1112 = vmatpush.msra.mxu1 %v1883_v33 }
0x1017   :  { %1113 = vmatpush.msra.mxu1 %v1887_v35 }
0x1019   :  { %1114 = vmatpush.msra.mxu1 %v1893_v36 }
0x1031   :  { %v890_v31 = vpop.permute.xlu0 %889 }
0x1032   :  { %1416 = vmatmul.msk.f32.vlgmr.msrb.gmra.mxu1 %vm159_vm5, %v890_v31 }
0x108f   :  { %v659_v24 = vpop.f32.mrf.mxu1 }
0x1090   :  { %v663_v47 = vrot.slane %v659_v24, 2 }
0x1092   :  { %v665_v50 = vadd.f32 %v663_v47, %v1866_v63 }
0x1094   :  { %v1410_v63 = vmul.f32 -1.442695, %v665_v50 }
0x10af   :  { %v910_v38 = vpop.f32.mrf.mxu1 }
0x10b0   :  { %v914_v39 = vrot.slane %v910_v38, 4 }
0x10b2   :  { %v916_v40 = vadd.f32 %v914_v39, %v1922_v7 }
0x10b4   :  { %1517 = vtanh.f32 %v916_v40  ;;  %v1417_v42 = vmul.f32 -1.442695, %v916_v40 }
0x10b6   :  { %1519 = vpow2.f32 %v1417_v42 }
0x10ba   :  { %v1518_v41 = vpop.eup %1517 }
0x10bb   :  { %942 = vrot.lane.b32.xlu1 %v1518_v41, %s1733_s29 }
0x10bc   :  { %v1520_v32 = vpop.eup %1519 }
0x10bd   :  { %v920_v33 = vadd.f32 1.0, %v1520_v32 }
0x10bf   :  { %1521 = vrcp.f32 %v920_v33  ;;  %v932_v46 = vand.u32 2147483648, %v920_v33  ;;  %vm926_vm15 = vweird.f32 %v920_v33  ;;  %v930_v10 = vand.u32 2147483647, %v920_v33 }
0x10c0   :  { %1523 = vtanh.f32 %v665_v50 }
0x10c1   :  { %v933_v49 = vor.u32 1.1754944e-38, %v932_v46  ;;  %vm931_vm4 = vcmp.eq.f32.partialorder %v930_v10, 8.507059e+37 }
0x10c5   :  { %v1522_v35 = vpop.eup %1521 }
0x10c6   :  { %v922_v43 = vmul.f32 %v1522_v35, %v920_v33  ;;  %vm927_vm14 = vweird.f32 %v1522_v35  ;;  %v1524_v54 = vpop.eup %1523 }
0x10c7   :  { %vm928_vm3 = vmor %vm926_vm15, %vm927_vm14 }
0x10c8   :  { %v923_v36 = vsub.f32 1.0, %v922_v43 }
0x10ca   :  { %v924_v44 = vmul.f32 %v1522_v35, %v923_v36 }
0x10cc   :  { %v925_v45 = vadd.f32 %v1522_v35, %v924_v44 }
0x10ce   :  { %v929_v48 = vsel %vm928_vm3, %v1522_v35, %v925_v45 }
0x10cf   :  { %v934_v52 = vsel %vm931_vm4, %v933_v49, %v929_v48 }
0x10d0   :  { %v940_v56 = vmul.f32 %v938_v55, %v934_v52 }
0x112d   :  { %v943_v51 = vpop.permute.xlu1 %942 }
0x112e   :  { %v945_v53 = vmul.f32 %v943_v51, %v934_v52 }
0x1130   :  { %947 = vrot.lane.b32.xlu2 %v945_v53, %s1733_s29 }
0x1138   :  { %691 = vrot.lane.b32.xlu2 %v1524_v54, %s1733_s29 }
0x118a   :  { %v948_v57 = vpop.permute.xlu2 %947 }
0x118b   :  { %v1981_v58 = vadd.f32 %v948_v57, %v940_v56 }
0x118d   :  { %1525 = vtanh.f32 %v1981_v58  ;;  %v1008_v45 = vrot.slane %v1981_v58, 6 }
0x118e   :  { %1527 = vpow2.f32 %v1410_v63 }
0x1192   :  { %v692_v8 = vpop.permute.xlu2 %691 }
0x1193   :  { %v1526_v59 = vpop.eup %1525 }
0x1194   :  { %953 = vrot.lane.b32.xlu0 %v1526_v59, %s1733_s29  ;;  %v1528_v60 = vpop.eup %1527 }
0x1195   :  { %v669_v61 = vadd.f32 1.0, %v1528_v60 }
0x1197   :  { %1529 = vrcp.f32 %v669_v61  ;;  %v681_v9 = vand.u32 2147483648, %v669_v61  ;;  %vm675_vm8 = vweird.f32 %v669_v61  ;;  %v679_v11 = vand.u32 2147483647, %v669_v61 }
0x1199   :  { %v682_v13 = vor.u32 1.1754944e-38, %v681_v9  ;;  %vm680_vm10 = vcmp.eq.f32.partialorder %v679_v11, 8.507059e+37 }
0x119d   :  { %v1530_v62 = vpop.eup %1529 }
0x119e   :  { %v671_v0 = vmul.f32 %v1530_v62, %v669_v61  ;;  %vm676_vm7 = vweird.f32 %v1530_v62 }
0x119f   :  { %vm677_vm9 = vmor %vm675_vm8, %vm676_vm7 }
0x11a0   :  { %v672_v1 = vsub.f32 1.0, %v671_v0 }
0x11a2   :  { %v673_v2 = vmul.f32 %v1530_v62, %v672_v1 }
0x11a4   :  { %v674_v5 = vadd.f32 %v1530_v62, %v673_v2 }
0x11a6   :  { %v678_v12 = vsel %vm677_vm9, %v1530_v62, %v674_v5 }
0x11a7   :  { %v683_v14 = vsel %vm680_vm10, %v682_v13, %v678_v12 }
0x11a8   :  { %v694_v16 = vmul.f32 %v692_v8, %v683_v14  ;;  %v689_v17 = vmul.f32 %v687_v23, %v683_v14 }
0x1206   :  { %v954_v3 = vpop.permute.xlu0 %953 }
0x1207   :  { %v956_v4 = vmul.f32 %v954_v3, %v934_v52 }
0x1209   :  { %v958_v6 = vrot.slane %v956_v4, 4 }
0x120b   :  { %959 = vrot.lane.b32.xlu1 %v958_v6, %s1734_s3 }
0x1213   :  { %696 = vrot.lane.b32.xlu1 %v694_v16, %s1733_s29 }
0x127d   :  { %v960_v18 = vpop.permute.xlu1 %959 }
0x127e   :  { %1418 = vmatmul.msk.f32.vlgmr.msrb.gmra.mxu3 %vm159_vm5, %v960_v18 }
0x1285   :  { %v697_v25 = vpop.permute.xlu1 %696 }
0x1286   :  { %v699_v26 = vadd.f32 %v697_v25, %v689_v17 }
0x1301   :  { %v980_v19 = vpop.f32.mrf.mxu3 }
0x1302   :  { %v984_v20 = vrot.slane %v980_v19, 2 }
0x1304   :  { %v986_v22 = vadd.f32 %v984_v20, %v1922_v7 }
0x1306   :  { %1531 = vtanh.f32 %v986_v22  ;;  %v1419_v29 = vmul.f32 -1.442695, %v986_v22 }
0x1307   :  { %1533 = vtanh.f32 %v699_v26 }
0x1308   :  { %1535 = vpow2.f32 %v1419_v29 }
0x130c   :  { %v1532_v27 = vpop.eup %1531 }
0x130d   :  { %1012 = vrot.lane.b32.xlu0 %v1532_v27, %s1733_s29  ;;  %v1534_v21 = vpop.eup %1533 }
0x130e   :  { %v1536_v30 = vpop.eup %1535 }
0x130f   :  { %v990_v37 = vadd.f32 1.0, %v1536_v30 }
0x1311   :  { %1537 = vrcp.f32 %v990_v37  ;;  %v1002_v39 = vand.u32 2147483648, %v990_v37  ;;  %vm996_vm12 = vweird.f32 %v990_v37  ;;  %v1000_v40 = vand.u32 2147483647, %v990_v37 }
0x1313   :  { %v1003_v42 = vor.u32 1.1754944e-38, %v1002_v39  ;;  %vm1001_vm1 = vcmp.eq.f32.partialorder %v1000_v40, 8.507059e+37 }
0x1315   :  { %702 = vrot.lane.b32.xlu0 %v1534_v21, %s1733_s29 }
0x1317   :  { %v1538_v31 = vpop.eup %1537 }
0x1318   :  { %v992_v7 = vmul.f32 %v1538_v31, %v990_v37  ;;  %vm997_vm11 = vweird.f32 %v1538_v31 }
0x1319   :  { %vm998_vm13 = vmor %vm996_vm12, %vm997_vm11 }
0x131a   :  { %v993_v24 = vsub.f32 1.0, %v992_v7 }
0x131c   :  { %v994_v15 = vmul.f32 %v1538_v31, %v993_v24 }
0x131e   :  { %v995_v38 = vadd.f32 %v1538_v31, %v994_v15 }
0x1320   :  { %v999_v41 = vsel %vm998_vm13, %v1538_v31, %v995_v38 }
0x1321   :  { %v1004_v33 = vsel %vm1001_vm1, %v1003_v42, %v999_v41 }
0x1322   :  { %v1010_v46 = vmul.f32 %v1008_v45, %v1004_v33 }
0x137f   :  { %v1013_v32 = vpop.permute.xlu0 %1012 }
0x1380   :  { %v1015_v35 = vmul.f32 %v1013_v32, %v1004_v33 }
0x1382   :  { %1017 = vrot.lane.b32.xlu2 %v1015_v35, %s1733_s29 }
0x1387   :  { %v703_v43 = vpop.permute.xlu0 %702 }
0x1388   :  { %v705_v36 = vmul.f32 %v703_v43, %v683_v14 }
0x138a   :  { %v714_v44 = vsel %vm710_vm6, %v1966_v28, %v705_v36 }
0x138b   :  { %731 = vrot.lane.b32.xlu2 %v714_v44, %s1734_s3 }
0x13dc   :  { %v1018_v10 = vpop.permute.xlu2 %1017 }
0x13dd   :  { %v1020_v47 = vadd.f32 %v1018_v10, %v1010_v46 }
0x13df   :  { %1539 = vtanh.f32 %v1020_v47  ;;  %v1075_v11 = vrot.slane %v1020_v47, 6 }
0x13e5   :  { %v1540_v48 = vpop.eup %1539  ;;  %v732_v49 = vpop.permute.xlu2 %731 }
0x13e6   :  { %1023 = vrot.lane.b32.xlu1 %v1540_v48, %s1733_s29  ;;  %1412 = vmatmul.msk.f32.gmra.mxu2 %vm159_vm5, %v732_v49 }
0x1458   :  { %v1024_v50 = vpop.permute.xlu1 %1023 }
0x1459   :  { %v1026_v51 = vmul.f32 %v1024_v50, %v1004_v33 }
0x145b   :  { %v1028_v52 = vrot.slane %v1026_v51, 6 }
0x145d   :  { %1029 = vrot.lane.b32.xlu0 %v1028_v52, %s1734_s3 }
0x1469   :  { %v757_v53 = vpop.f32.mrf.mxu2 }
0x146a   :  { %v2002_v54 = vadd.f32 %v1918_v34, %v757_v53 }
0x14cf   :  { %v1030_v28 = vpop.permute.xlu0 %1029 }
0x14d0   :  { %1420 = vmatmul.msk.f32.vlgmr.msrb.gmra.mxu0 %vm159_vm5, %v1030_v28 }
0x154d   :  { %v1050_v55 = vpop.f32.mrf.mxu0 }
0x154e   :  { %v1053_v56 = vadd.f32 %v1050_v55, %v2002_v54 }
0x1550   :  { %1541 = vtanh.f32 %v1053_v56  ;;  %v1421_v58 = vmul.f32 -1.442695, %v1053_v56 }
0x1552   :  { %1543 = vpow2.f32 %v1421_v58 }
0x1556   :  { %v1542_v57 = vpop.eup %1541 }
0x1557   :  { %1079 = vrot.lane.b32.xlu1 %v1542_v57, %s1733_s29 }
0x1558   :  { %v1544_v59 = vpop.eup %1543 }
0x1559   :  { %v1057_v63 = vadd.f32 1.0, %v1544_v59 }
0x155b   :  { %1545 = vrcp.f32 %v1057_v63  ;;  %v1069_v34 = vand.u32 2147483648, %v1057_v63  ;;  %vm1063_vm2 = vweird.f32 %v1057_v63  ;;  %v1067_v2 = vand.u32 2147483647, %v1057_v63 }
0x155d   :  { %v1070_v4 = vor.u32 1.1754944e-38, %v1069_v34  ;;  %vm1068_vm15 = vcmp.eq.f32.partialorder %v1067_v2, 8.507059e+37 }
0x1561   :  { %v1546_v60 = vpop.eup %1545 }
0x1562   :  { %v1059_v61 = vmul.f32 %v1546_v60, %v1057_v63  ;;  %vm1064_vm6 = vweird.f32 %v1546_v60 }
0x1563   :  { %vm1065_vm14 = vmor %vm1063_vm2, %vm1064_vm6  ;;  %vm1373_vm2 = vcmask 25600  }
0x1564   :  { %v1060_v62 = vsub.f32 1.0, %v1059_v61 }
0x1566   :  { %v1061_v0 = vmul.f32 %v1546_v60, %v1060_v62 }
0x1568   :  { %v1062_v1 = vadd.f32 %v1546_v60, %v1061_v0 }
0x156a   :  { %v1066_v3 = vsel %vm1065_vm14, %v1546_v60, %v1062_v1 }
0x156b   :  { %v1071_v6 = vsel %vm1068_vm15, %v1070_v4, %v1066_v3 }
0x156c   :  { %v1077_v12 = vmul.f32 %v1075_v11, %v1071_v6 }
0x15c9   :  { %v1080_v5 = vpop.permute.xlu1 %1079 }
0x15ca   :  { %v1082_v9 = vmul.f32 %v1080_v5, %v1071_v6 }
0x15cc   :  { %1084 = vrot.lane.b32.xlu2 %v1082_v9, %s1733_s29 }
0x1626   :  { %v1085_v13 = vpop.permute.xlu2 %1084 }
0x1627   :  { %v1087_v8 = vadd.f32 %v1085_v13, %v1077_v12  ;;  %v1305_v12 = vld [vmem:[#allocation10 + $0x8] sm:$0xff]  ;;  %v1304_v13 = vld [vmem:[#allocation10] sm:$0xff] }
0x1628   :  { %1327 = vmatpush.msra.mxu0 %v1305_v12 }
0x1629   :  { %1547 = vtanh.f32 %v1087_v8  ;;  %v1144_v42 = vrot.slane %v1087_v8, 6  ;;  %v1303_v8 = vld [vmem:[#allocation2 + $0xe] sm:$0x3] }
0x162a   :  { %1328 = vmatpush.msra.mxu0 %v1304_v13 }
0x162b   :  { %1428 = vmatmul.msk.f32.vlgmr.msra.gmra.mxu0 %vm129_vm0, %v1303_v8 }
0x162f   :  { %v1548_v14 = vpop.eup %1547 }
0x1630   :  { %1090 = vrot.lane.b32.xlu0 %v1548_v14, %s1733_s29 }
0x16a2   :  { %v1091_v16 = vpop.permute.xlu0 %1090 }
0x16a3   :  { %v1093_v18 = vmul.f32 %v1091_v16, %v1071_v6 }
0x16a5   :  { %1095 = vrot.lane.b32.xlu1 %v1093_v18, %s1734_s3 }
0x1717   :  { %v1096_v19 = vpop.permute.xlu1 %1095 }
0x1718   :  { %1422 = vmatmul.msk.f32.vlgmr.msra.gmra.mxu1 %vm159_vm5, %v1096_v19 }
0x1795   :  { %v1116_v20 = vpop.f32.mrf.mxu1 }
0x1796   :  { %v1120_v22 = vrot.slane %v1116_v20, 6 }
0x1798   :  { %v1122_v23 = vadd.f32 %v1120_v22, %v2002_v54 }
0x179a   :  { %1549 = vtanh.f32 %v1122_v23  ;;  %v1423_v17 = vmul.f32 -1.442695, %v1122_v23 }
0x179c   :  { %1551 = vpow2.f32 %v1423_v17 }
0x17a0   :  { %v1550_v25 = vpop.eup %1549 }
0x17a1   :  { %1148 = vrot.lane.b32.xlu2 %v1550_v25, %s1733_s29 }
0x17a2   :  { %v1552_v26 = vpop.eup %1551 }
0x17a3   :  { %v1126_v27 = vadd.f32 1.0, %v1552_v26 }
0x17a5   :  { %1553 = vrcp.f32 %v1126_v27  ;;  %v1138_v7 = vand.u32 2147483648, %v1126_v27  ;;  %vm1132_vm4 = vweird.f32 %v1126_v27  ;;  %v1136_v24 = vand.u32 2147483647, %v1126_v27 }
0x17a7   :  { %v1139_v38 = vor.u32 1.1754944e-38, %v1138_v7  ;;  %vm1137_vm8 = vcmp.eq.f32.partialorder %v1136_v24, 8.507059e+37 }
0x17ab   :  { %v1554_v21 = vpop.eup %1553 }
0x17ac   :  { %v1128_v29 = vmul.f32 %v1554_v21, %v1126_v27  ;;  %vm1133_vm3 = vweird.f32 %v1554_v21 }
0x17ad   :  { %vm1134_vm7 = vmor %vm1132_vm4, %vm1133_vm3 }
0x17ae   :  { %v1129_v30 = vsub.f32 1.0, %v1128_v29 }
0x17b0   :  { %v1130_v37 = vmul.f32 %v1554_v21, %v1129_v30 }
0x17b2   :  { %v1131_v31 = vadd.f32 %v1554_v21, %v1130_v37 }
0x17b4   :  { %v1135_v15 = vsel %vm1134_vm7, %v1554_v21, %v1131_v31 }
0x17b5   :  { %v1140_v40 = vsel %vm1137_vm8, %v1139_v38, %v1135_v15  ;;  %v1443_v15 = vld [vmem:[%s2059_s8] ss:$0 sm:$0xff]  ;;  %v1330_v38 = vpop.f32.mrf.mxu0 }
0x17b6   :  { %v1146_v32 = vmul.f32 %v1144_v42, %v1140_v40 }
0x17fb   :  { %v1149_v39 = vpop.permute.xlu2 %1148 }
0x17fc   :  { %v1151_v41 = vmul.f32 %v1149_v39, %v1140_v40  ;;  %v1331_v39 = vadd.f32 %v1443_v15, %v1330_v38 }
0x17fe   :  { %1153 = vrot.lane.b32.xlu0 %v1151_v41, %s1733_s29 }
0x1870   :  { %v1154_v33 = vpop.permute.xlu0 %1153 }
0x1871   :  { %v1156_v35 = vadd.f32 %v1154_v33, %v1146_v32 }
0x1873   :  { %1555 = vtanh.f32 %v1156_v35  ;;  %v1214_v1 = vrot.slane %v1156_v35, 6 }
0x1879   :  { %v1556_v43 = vpop.eup %1555 }
0x187a   :  { %1159 = vrot.lane.b32.xlu1 %v1556_v43, %s1733_s29  ;;  %v1342_v43 = vld [vmem:[%s2060_s9 + $0x18] sm:$0xff] }
0x187b   :  { %1365 = vmatpush.msrb.mxu1 %v1342_v43 }
0x18ec   :  { %v1160_v36 = vpop.permute.xlu1 %1159 }
0x18ed   :  { %v1162_v44 = vmul.f32 %v1160_v36, %v1140_v40  ;;  %v1334_v40 = vrot.slane %v1331_v39, 2  ;;  %v1341_v36 = vld [vmem:[%s2060_s9 + $0x10] sm:$0xff] }
0x18ee   :  { %1366 = vmatpush.msrb.mxu1 %v1341_v36 }
0x18ef   :  { %v1164_v45 = vrot.slane %v1162_v44, 2  ;;  %v1340_v44 = vld [vmem:[%s2060_s9 + $0x8] sm:$0xff] }
0x18f0   :  { %1367 = vmatpush.msrb.mxu1 %v1340_v44 }
0x18f1   :  { %1165 = vrot.lane.b32.xlu2 %v1164_v45, %s1734_s3  ;;  %v1339_v45 = vld [vmem:[%s2060_s9] sm:$0xff] }
0x18f2   :  { %1368 = vmatpush.msrb.mxu1 %v1339_v45 }
0x194b   :  { %v1166_v46 = vpop.permute.xlu2 %1165 }
0x194c   :  { %1424 = vmatmul.msk.f32.vlgmr.msrb.gmra.mxu2 %vm159_vm5, %v1166_v46 }
0x19cf   :  { %v1186_v10 = vpop.f32.mrf.mxu2 }
0x19d0   :  { %v1190_v47 = vrot.slane %v1186_v10, 4 }
0x19d2   :  { %v1192_v48 = vadd.f32 %v1190_v47, %v2002_v54 }
0x19d4   :  { %1557 = vtanh.f32 %v1192_v48  ;;  %v1425_v50 = vmul.f32 -1.442695, %v1192_v48 }
0x19d6   :  { %1559 = vpow2.f32 %v1425_v50 }
0x19da   :  { %v1558_v49 = vpop.eup %1557 }
0x19db   :  { %1218 = vrot.lane.b32.xlu0 %v1558_v49, %s1733_s29 }
0x19dc   :  { %v1560_v51 = vpop.eup %1559 }
0x19dd   :  { %v1196_v52 = vadd.f32 1.0, %v1560_v51  ;;  %v1444_v51 = vld [vmem:[%s2061_s10] ss:$0 sm:$0xff] }
0x19df   :  { %1561 = vrcp.f32 %v1196_v52  ;;  %v1208_v58 = vand.u32 2147483648, %v1196_v52  ;;  %vm1202_vm10 = vweird.f32 %v1196_v52  ;;  %v1206_v59 = vand.u32 2147483647, %v1196_v52 }
0x19e1   :  { %v1209_v60 = vor.u32 1.1754944e-38, %v1208_v58  ;;  %vm1207_vm12 = vcmp.eq.f32.partialorder %v1206_v59, 8.507059e+37 }
0x19e5   :  { %v1562_v28 = vpop.eup %1561 }
0x19e6   :  { %v1198_v53 = vmul.f32 %v1562_v28, %v1196_v52  ;;  %vm1203_vm9 = vweird.f32 %v1562_v28 }
0x19e7   :  { %vm1204_vm11 = vmor %vm1202_vm10, %vm1203_vm9 }
0x19e8   :  { %v1199_v55 = vsub.f32 1.0, %v1198_v53 }
0x19ea   :  { %v1200_v56 = vmul.f32 %v1562_v28, %v1199_v55 }
0x19ec   :  { %v1201_v57 = vadd.f32 %v1562_v28, %v1200_v56 }
0x19ee   :  { %v1205_v63 = vsel %vm1204_vm11, %v1562_v28, %v1201_v57 }
0x19ef   :  { %v1210_v62 = vsel %vm1207_vm12, %v1209_v60, %v1205_v63 }
0x19f0   :  { %v1216_v34 = vmul.f32 %v1214_v1, %v1210_v62 }
0x1a4d   :  { %v1219_v61 = vpop.permute.xlu0 %1218 }
0x1a4e   :  { %v1221_v0 = vmul.f32 %v1219_v61, %v1210_v62 }
0x1a50   :  { %1223 = vrot.lane.b32.xlu1 %v1221_v0, %s1733_s29 }
0x1ac2   :  { %v1224_v2 = vpop.permute.xlu1 %1223 }
0x1ac3   :  { %v1226_v3 = vadd.f32 %v1224_v2, %v1216_v34 }
0x1ac5   :  { %1563 = vtanh.f32 %v1226_v3  ;;  %v1284_v41 = vrot.slane %v1226_v3, 6 }
0x1acb   :  { %v1564_v4 = vpop.eup %1563 }
0x1acc   :  { %1229 = vrot.lane.b32.xlu2 %v1564_v4, %s1733_s29 }
0x1b26   :  { %v1230_v5 = vpop.permute.xlu2 %1229 }
0x1b27   :  { %v1232_v6 = vmul.f32 %v1230_v5, %v1210_v62 }
0x1b29   :  { %v1234_v9 = vrot.slane %v1232_v6, 4 }
0x1b2b   :  { %1235 = vrot.lane.b32.xlu0 %v1234_v9, %s1734_s3 }
0x1b9d   :  { %v1236_v11 = vpop.permute.xlu0 %1235 }
0x1b9e   :  { %1426 = vmatmul.msk.f32.vlgmr.msra.gmra.mxu3 %vm159_vm5, %v1236_v11 }
0x1c21   :  { %v1256_v14 = vpop.f32.mrf.mxu3 }
0x1c22   :  { %v1260_v16 = vrot.slane %v1256_v14, 2 }
0x1c24   :  { %v1262_v18 = vadd.f32 %v1260_v16, %v2002_v54 }
0x1c26   :  { %1565 = vtanh.f32 %v1262_v18  ;;  %v1427_v20 = vmul.f32 -1.442695, %v1262_v18 }
0x1c28   :  { %1567 = vpow2.f32 %v1427_v20 }
0x1c2c   :  { %v1566_v19 = vpop.eup %1565 }
0x1c2d   :  { %1288 = vrot.lane.b32.xlu1 %v1566_v19, %s1733_s29 }
0x1c2e   :  { %v1568_v22 = vpop.eup %1567 }
0x1c2f   :  { %v1266_v23 = vadd.f32 1.0, %v1568_v22 }
0x1c31   :  { %1569 = vrcp.f32 %v1266_v23  ;;  %v1278_v29 = vand.u32 2147483648, %v1266_v23  ;;  %vm1272_vm0 = vweird.f32 %v1266_v23  ;;  %v1276_v30 = vand.u32 2147483647, %v1266_v23 }
0x1c33   :  { %v1279_v37 = vor.u32 1.1754944e-38, %v1278_v29  ;;  %vm1277_vm6 = vcmp.eq.f32.partialorder %v1276_v30, 8.507059e+37 }
0x1c35   :  { %1335 = vrot.lane.b32.xlu1 %v1334_v40, %s1734_s3 }
0x1c37   :  { %v1570_v25 = vpop.eup %1569 }
0x1c38   :  { %v1268_v17 = vmul.f32 %v1570_v25, %v1266_v23  ;;  %vm1273_vm13 = vweird.f32 %v1570_v25 }
0x1c39   :  { %vm1274_vm1 = vmor %vm1272_vm0, %vm1273_vm13 }
0x1c3a   :  { %v1269_v26 = vsub.f32 1.0, %v1268_v17 }
0x1c3c   :  { %v1270_v27 = vmul.f32 %v1570_v25, %v1269_v26 }
0x1c3e   :  { %v1271_v21 = vadd.f32 %v1570_v25, %v1270_v27 }
0x1c40   :  { %v1275_v54 = vsel %vm1274_vm1, %v1570_v25, %v1271_v21 }
0x1c41   :  { %v1280_v7 = vsel %vm1277_vm6, %v1279_v37, %v1275_v54 }
0x1c42   :  { %v1286_v42 = vmul.f32 %v1284_v41, %v1280_v7 }
0x1c9f   :  { %v1289_v31 = vpop.permute.xlu1 %1288 }
0x1ca0   :  { %v1291_v24 = vmul.f32 %v1289_v31, %v1280_v7 }
0x1ca2   :  { %1293 = vrot.lane.b32.xlu2 %v1291_v24, %s1733_s29 }
0x1ca7   :  { %v1336_v10 = vpop.permute.xlu1 %1335 }
0x1cfc   :  { %v1294_v32 = vpop.permute.xlu2 %1293 }
0x1cfd   :  { %v1296_v33 = vadd.f32 %v1294_v32, %v1286_v42 }
0x1cff   :  { %1571 = vtanh.f32 %v1296_v33 }
0x1d05   :  { %v1572_v35 = vpop.eup %1571 }
0x1d06   :  { %1299 = vrot.lane.b32.xlu0 %v1572_v35, %s1733_s29 }
0x1d78   :  { %v1300_v46 = vpop.permute.xlu0 %1299 }
0x1d79   :  { %v1302_v47 = vmul.f32 %v1300_v46, %v1280_v7 }
0x1d7b   :  { %v1338_v48 = vadd.f32 %v1336_v10, %v1302_v47 }
0x1d7d   :  { %v1348_v49 = vrot.slane %v1338_v48, 6 }
0x1d7f   :  { %1349 = vrot.lane.b32.xlu2 %v1348_v49, %s1734_s3 }
0x1dd9   :  { %v1350_v50 = vpop.permute.xlu2 %1349 }
0x1dda   :  { %1429 = vmatmul.msk.f32.vlgmr.msrb.gmra.mxu1 %vm159_vm5, %v1350_v50 }
0x1e57   :  { %v1370_v52 = vpop.f32.mrf.mxu1 }
0x1e58   :  { %v1371_v28 = vadd.f32 %v1444_v51, %v1370_v52 }
0x1e5a   :  { %1374 = vst.msk [vmem:[#allocation11] sm:$0x3] %vm1373_vm2, %v1371_v28 }
0x1e5b   :  { %1385 = dma.vmem_to_hbm [thread:$0]  %s1381_s21, 32, %s1383_s22, [#allocation4]  }
0x1e5c   :  { %1723 = dma.done.wait [#allocation4], 32  }
0x1e5d   :  { %1724 = vsyncadd [#allocation4], 4294967264 }
0x1e5e   :  { %1390 = vsyncpa [#allocation3], 1 }
0x1e5f   :  { %1391 = vsyncpa [#allocation6], 1 }
0x1e60   :  { %1392 = vsyncpa [#allocation9], 1 }
0x1e61   :  { %1393 = vsyncpa [#allocation4], 1 }

</bundles_post_ra>
